<compile_context>
chip_gen: v7x
topology: tpu7x:2x2x1
jax: 0.10.0
libtpu: 0.0.40
codegen_flags: <defaults>
</compile_context>

<pallas_src>
import math
import functools

import jax
import jax.numpy as jnp
from jax.experimental import pallas as pl
from jax.experimental.pallas import tpu as pltpu


def _layernorm(v, w, b, eps=1e-5):
    mu = jnp.mean(v, axis=-1, keepdims=True)
    var = jnp.mean(jnp.square(v - mu), axis=-1, keepdims=True)
    return (v - mu) * jax.lax.rsqrt(var + eps) * w + b


def block_kernel(x_ref,
                 ln1_w, ln1_b, wq, bq, wkv, bkv, wproj, bproj,
                 ln2_w, ln2_b, wfc, bfc, wpr2, bpr2,
                 o_ref, *, n_heads, tq):
    T, C = x_ref.shape
    hd = C // n_heads
    scale = 1.0 / math.sqrt(hd)
    row0 = pl.multiple_of(pl.program_id(1) * tq, tq)

    ln1w = ln1_w[...]
    ln1b = ln1_b[...]

    # ---- K/V over the full sequence (needed by every query tile) ----
    x_full = x_ref[...].astype(jnp.float32)                       # (T, C)
    h_full = _layernorm(x_full, ln1w, ln1b).astype(jnp.bfloat16)
    kv = jnp.dot(h_full, wkv[...],
                 preferred_element_type=jnp.float32) + bkv[...]   # (T, 2C) f32
    k = kv[:, :C].astype(jnp.bfloat16)                            # (T, C)
    v = kv[:, C:].astype(jnp.bfloat16)                            # (T, C)

    # ---- query tile: x + proj(attn(ln_1(x))) ----
    x_q = x_ref[pl.ds(row0, tq), :].astype(jnp.float32)           # (tq, C)
    h_q = _layernorm(x_q, ln1w, ln1b)
    q = jnp.dot(h_q.astype(jnp.bfloat16), wq[...],
                preferred_element_type=jnp.float32) + bq[...]
    q = (q * scale).astype(jnp.bfloat16)       # fold 1/sqrt(hd) into q (tq*C work)

    head_outs = []
    for i in range(n_heads):
        sl = slice(i * hd, (i + 1) * hd)
        # scores: contract last dims (no explicit transpose)  -> (tq, T) f32
        s = jax.lax.dot_general(q[:, sl], k[:, sl],
                                (((1,), (1,)), ((), ())),
                                preferred_element_type=jnp.float32)
        s = s - jnp.max(s, axis=-1, keepdims=True)
        # TODO(synk): on v6e/v7x this exp could run on bf16 values (2x EUP).
        p = jnp.exp(s)
        denom = jnp.sum(p, axis=-1, keepdims=True)
        y = jnp.dot(p.astype(jnp.bfloat16), v[:, sl],
                    preferred_element_type=jnp.float32)            # (tq, hd)
        # normalize AFTER PV: tq*hd divides instead of tq*T
        y = y * pl.reciprocal(denom, approx=True)
        head_outs.append(y.astype(jnp.bfloat16))

    y_cat = jnp.concatenate(head_outs, axis=-1)                    # (tq, C) bf16
    att = jnp.dot(y_cat, wproj[...],
                  preferred_element_type=jnp.float32) + bproj[...]
    x1 = x_q + att

    # ---- MLP branch: x + c_proj(gelu(c_fc(ln_2(x)))) ----
    h2 = _layernorm(x1, ln2_w[...], ln2_b[...])
    f = jnp.dot(h2.astype(jnp.bfloat16), wfc[...],
                preferred_element_type=jnp.float32) + bfc[...]
    # exact (erf) GELU in f32 — matches torch nn.GELU() default
    f = 0.5 * f * (1.0 + jax.lax.erf(f * (1.0 / math.sqrt(2.0))))
    f = jnp.dot(f.astype(jnp.bfloat16), wpr2[...],
                preferred_element_type=jnp.float32) + bpr2[...]

    o_ref[...] = (x1 + f).astype(o_ref.dtype)


_PARAM_ORDER = ["ln1_w", "ln1_b", "wq", "bq", "wkv", "bkv", "wproj", "bproj",
                "ln2_w", "ln2_b", "wfc", "bfc", "wpr2", "bpr2"]


def _prepare_params(params):
    """One-time layout plumbing outside the kernel: split qkv into q and kv."""
    C = params["wqkv"].shape[0]
    p = {k: v for k, v in params.items() if k not in ("wqkv", "bqkv")}
    p["wq"] = params["wqkv"][:, :C]
    p["wkv"] = params["wqkv"][:, C:]
    p["bq"] = params["bqkv"][:, :C]
    p["bkv"] = params["bqkv"][:, C:]
    return p


def _vmem_cap_bytes():
    """~85% of physical VMEM (leaves headroom for Mosaic internal scratch)."""
    try:
        cap = int(pltpu.get_tpu_info().vmem_capacity_bytes)
    except Exception:
        cap = 128 * 1024 * 1024
    return max(32 * 1024 * 1024, int(0.85 * cap))


def _vmem_estimate_bytes(T, C, ffn, tq, params):
    w_bytes = sum(int(p.size) * p.dtype.itemsize for p in params.values())  # 1-buffered
    x_bytes = 2 * T * C * 4            # full x slab, double-buffered
    o_bytes = 2 * tq * C * 4           # output tile, double-buffered
    work = (T * C * 2 +                # h_full bf16
            T * 2 * C * (4 + 2) +      # kv f32 + bf16 k/v
            2 * tq * T * 4 +           # one head's scores + probs (f32)
            2 * tq * ffn * 4 +         # MLP activation pre/post GELU (f32)
            4 * tq * C * 4)            # q / attn out / residual temporaries
    return int(1.35 * (w_bytes + x_bytes + o_bytes + work))


def _default_tq(T, cap=256):
    for cand in range(min(T, cap), 7, -8):
        if T % cand == 0 and cand % 8 == 0:
            return cand
    return T


def transformer_block(x, params, n_heads, *, tq=None, single_buffer_weights=True):
    B, T, C = x.shape
    assert C % n_heads == 0
    p = _prepare_params(params)
    ffn = p["wfc"].shape[1]

    if tq is None:
        tq = _default_tq(T)
    tq = min(tq, T)
    assert T % tq == 0, "tq must divide T"
    assert tq == T or tq % 8 == 0, "tq must be a multiple of 8 (sublane tile)"

    # Shrink the query tile (not the vmem limit) until the footprint fits.
    cap = _vmem_cap_bytes()
    while (_vmem_estimate_bytes(T, C, ffn, tq, p) > cap and tq > 8
           and T % (tq // 2) == 0 and (tq // 2) % 8 == 0):
        tq //= 2
    vmem_limit = min(max(32 * 1024 * 1024,
                         _vmem_estimate_bytes(T, C, ffn, tq, p)), cap)
    nq = T // tq

    # x: one full (T, C) slab per batch element (block index constant over the
    # q-tile axis -> fetched once per b).  o: one (tq, C) tile per grid step.
    x_spec = pl.BlockSpec((pl.Squeezed(), T, C), lambda b, q: (b, 0, 0))
    o_spec = pl.BlockSpec((pl.Squeezed(), tq, C), lambda b, q: (b, q, 0))

    # Weights are grid-invariant -> single VMEM buffer (no double buffering).
    wkw = ({"pipeline_mode": pl.Buffered(1)}
           if (single_buffer_weights and hasattr(pl, "Buffered")) else {})

    in_specs = [x_spec]
    args = [x]
    for name in _PARAM_ORDER:
        arr = p[name]
        args.append(arr)
        in_specs.append(
            pl.BlockSpec(arr.shape, lambda b, q, nd=arr.ndim: (0,) * nd, **wkw))

    return pl.pallas_call(
        functools.partial(block_kernel, n_heads=n_heads, tq=tq),
        out_shape=jax.ShapeDtypeStruct((B, T, C), x.dtype),
        grid_spec=pltpu.PrefetchScalarGridSpec(
            num_scalar_prefetch=0,
            grid=(B, nq),
            in_specs=in_specs,
            out_specs=o_spec,
            scratch_shapes=[],
        ),
        compiler_params=pltpu.CompilerParams(
            dimension_semantics=("parallel", "parallel"),
            vmem_limit_bytes=vmem_limit),
    )(*args)


def make_params(key, n_embd, ffn_size):
    ks = jax.random.split(key, 12)
    s = 0.02
    f32, bf16 = jnp.float32, jnp.bfloat16
    return {
        # layernorms / biases stay f32 (elementwise math path)
        "ln1_w": (jnp.ones((1, n_embd)) + s * jax.random.normal(ks[0], (1, n_embd))).astype(f32),
        "ln1_b": (s * jax.random.normal(ks[1], (1, n_embd))).astype(f32),
        "ln2_w": (jnp.ones((1, n_embd)) + s * jax.random.normal(ks[2], (1, n_embd))).astype(f32),
        "ln2_b": (s * jax.random.normal(ks[3], (1, n_embd))).astype(f32),
        # matmul weights stored bf16 (pre-transposed to (in, out) vs. torch)
        "wqkv":  (s * jax.random.normal(ks[4], (n_embd, 3 * n_embd))).astype(bf16),
        "bqkv":  (s * jax.random.normal(ks[5], (1, 3 * n_embd))).astype(f32),
        "wproj": (s * jax.random.normal(ks[6], (n_embd, n_embd))).astype(bf16),
        "bproj": (s * jax.random.normal(ks[7], (1, n_embd))).astype(f32),
        "wfc":   (s * jax.random.normal(ks[8], (n_embd, ffn_size))).astype(bf16),
        "bfc":   (s * jax.random.normal(ks[9], (1, ffn_size))).astype(f32),
        "wpr2":  (s * jax.random.normal(ks[10], (ffn_size, n_embd))).astype(bf16),
        "bpr2":  (s * jax.random.normal(ks[11], (1, n_embd))).astype(f32),
    }


def ref_block(x, p, n_heads):
    """Pure-JAX (f32) reference mirroring the PyTorch Block forward."""
    def ln(v, w, b):
        mu = v.mean(-1, keepdims=True)
        var = ((v - mu) ** 2).mean(-1, keepdims=True)
        return (v - mu) / jnp.sqrt(var + 1e-5) * w + b

    B, T, C = x.shape
    hd = C // n_heads
    h = ln(x, p["ln1_w"][0].astype(jnp.float32), p["ln1_b"][0])
    qkv = h @ p["wqkv"].astype(jnp.float32) + p["bqkv"][0]
    q, k, v = jnp.split(qkv, 3, axis=-1)
    q = q.reshape(B, T, n_heads, hd).transpose(0, 2, 1, 3)
    k = k.reshape(B, T, n_heads, hd).transpose(0, 2, 1, 3)
    v = v.reshape(B, T, n_heads, hd).transpose(0, 2, 1, 3)
    s = jnp.einsum("bhqd,bhkd->bhqk", q, k) / math.sqrt(hd)
    a = jax.nn.softmax(s, axis=-1)
    y = jnp.einsum("bhqk,bhkd->bhqd", a, v)
    y = y.transpose(0, 2, 1, 3).reshape(B, T, C)
    y = y @ p["wproj"].astype(jnp.float32) + p["bproj"][0]
    x = x + y
    h2 = ln(x, p["ln2_w"][0].astype(jnp.float32), p["ln2_b"][0])
    f = h2 @ p["wfc"].astype(jnp.float32) + p["bfc"][0]
    f = 0.5 * f * (1.0 + jax.lax.erf(f / math.sqrt(2.0)))
    f = f @ p["wpr2"].astype(jnp.float32) + p["bpr2"][0]
    return x + f


if __name__ == "__main__":
    B, T, C, H = 2, 16, 32, 4     # tq=8 below -> exercises the query-tile axis
    FFN = 4 * C

    key = jax.random.PRNGKey(0)
    kx, kp = jax.random.split(key)
    x = jax.random.normal(kx, (B, T, C), jnp.float32)
    params = make_params(kp, C, FFN)

    try:
        out = transformer_block(x, params, n_heads=H, tq=8)
    except Exception:
        # Fallback if this JAX build rejects pl.Buffered(1) single-buffering.
        out = transformer_block(x, params, n_heads=H, tq=8,
                                single_buffer_weights=False)
    out = jax.block_until_ready(out)

    ref = ref_block(x, params, H)
    assert out.shape == (B, T, C)
    # bf16 matmul operands in the kernel vs. f32 reference -> looser tolerance.
    assert jnp.allclose(out, ref, atol=2e-2, rtol=2e-2), \
        f"max err {jnp.max(jnp.abs(out - ref))}"

    print("KERNEL_OK")
</pallas_src>

<mosaic_0001>
module attributes {stable_mosaic.version = 11 : i64} {
  func.func @block_kernel(%arg0: i32, %arg1: i32, %arg2: memref<1x16x32xf32, #tpu.memory_space<vmem>>, %arg3: memref<1x32xf32, #tpu.memory_space<vmem>>, %arg4: memref<1x32xf32, #tpu.memory_space<vmem>>, %arg5: memref<32x32xbf16, #tpu.memory_space<vmem>>, %arg6: memref<1x32xf32, #tpu.memory_space<vmem>>, %arg7: memref<32x64xbf16, #tpu.memory_space<vmem>>, %arg8: memref<1x64xf32, #tpu.memory_space<vmem>>, %arg9: memref<32x32xbf16, #tpu.memory_space<vmem>>, %arg10: memref<1x32xf32, #tpu.memory_space<vmem>>, %arg11: memref<1x32xf32, #tpu.memory_space<vmem>>, %arg12: memref<1x32xf32, #tpu.memory_space<vmem>>, %arg13: memref<32x128xbf16, #tpu.memory_space<vmem>>, %arg14: memref<1x128xf32, #tpu.memory_space<vmem>>, %arg15: memref<128x32xbf16, #tpu.memory_space<vmem>>, %arg16: memref<1x32xf32, #tpu.memory_space<vmem>>, %arg17: memref<1x8x32xf32, #tpu.memory_space<vmem>>) attributes {dimension_semantics = [#tpu.dimension_semantics<parallel>, #tpu.dimension_semantics<parallel>], iteration_bounds = array<i64: 2, 2>, scalar_prefetch = 0 : i64, scratch_operands = 0 : i64, tpu.core_type = #tpu.core_type<tc>, window_params = [{transform_indices = @transform_0, window_bounds = array<i64: 1, 16, 32>}, {pipeline_mode = #tpu.pipeline_mode<synchronous>, transform_indices = @transform_1, window_bounds = array<i64: 1, 32>}, {pipeline_mode = #tpu.pipeline_mode<synchronous>, transform_indices = @transform_2, window_bounds = array<i64: 1, 32>}, {pipeline_mode = #tpu.pipeline_mode<synchronous>, transform_indices = @transform_3, window_bounds = array<i64: 32, 32>}, {pipeline_mode = #tpu.pipeline_mode<synchronous>, transform_indices = @transform_4, window_bounds = array<i64: 1, 32>}, {pipeline_mode = #tpu.pipeline_mode<synchronous>, transform_indices = @transform_5, window_bounds = array<i64: 32, 64>}, {pipeline_mode = #tpu.pipeline_mode<synchronous>, transform_indices = @transform_6, window_bounds = array<i64: 1, 64>}, {pipeline_mode = #tpu.pipeline_mode<synchronous>, transform_indices = @transform_7, window_bounds = array<i64: 32, 32>}, {pipeline_mode = #tpu.pipeline_mode<synchronous>, transform_indices = @transform_8, window_bounds = array<i64: 1, 32>}, {pipeline_mode = #tpu.pipeline_mode<synchronous>, transform_indices = @transform_9, window_bounds = array<i64: 1, 32>}, {pipeline_mode = #tpu.pipeline_mode<synchronous>, transform_indices = @transform_10, window_bounds = array<i64: 1, 32>}, {pipeline_mode = #tpu.pipeline_mode<synchronous>, transform_indices = @transform_11, window_bounds = array<i64: 32, 128>}, {pipeline_mode = #tpu.pipeline_mode<synchronous>, transform_indices = @transform_12, window_bounds = array<i64: 1, 128>}, {pipeline_mode = #tpu.pipeline_mode<synchronous>, transform_indices = @transform_13, window_bounds = array<i64: 128, 32>}, {pipeline_mode = #tpu.pipeline_mode<synchronous>, transform_indices = @transform_14, window_bounds = array<i64: 1, 32>}, {transform_indices = @transform_15, window_bounds = array<i64: 1, 8, 32>}]} {
    %c8_i32 = arith.constant 8 : i32
    %0 = arith.muli %arg1, %c8_i32 : i32
    %1 = tpu.assume_multiple %0, 8 : i32
    %c0 = arith.constant 0 : index
    %c0_0 = arith.constant 0 : index
    %2 = vector.load %arg3[%c0, %c0_0] : memref<1x32xf32, #tpu.memory_space<vmem>>, vector<1x32xf32>
    %c0_1 = arith.constant 0 : index
    %c0_2 = arith.constant 0 : index
    %3 = vector.load %arg4[%c0_1, %c0_2] : memref<1x32xf32, #tpu.memory_space<vmem>>, vector<1x32xf32>
    %c0_3 = arith.constant 0 : index
    %c0_4 = arith.constant 0 : index
    %c0_5 = arith.constant 0 : index
    %4 = vector.load %arg2[%c0_3, %c0_4, %c0_5] : memref<1x16x32xf32, #tpu.memory_space<vmem>>, vector<1x16x32xf32>
    %5 = vector.shape_cast %4 : vector<1x16x32xf32> to vector<16x32xf32>
    %cst = arith.constant dense<0.000000e+00> : vector<16xf32>
    %6 = vector.multi_reduction <add>, %5, %cst [1] : vector<16x32xf32> to vector<16xf32>
    %7 = vector.shape_cast %6 : vector<16xf32> to vector<16x1xf32>
    %cst_6 = arith.constant 3.200000e+01 : f32
    %8 = vector.broadcast %cst_6 : f32 to vector<16x1xf32>
    %9 = arith.divf %7, %8 : vector<16x1xf32>
    %10 = vector.broadcast %9 : vector<16x1xf32> to vector<16x32xf32>
    %11 = arith.subf %5, %10 : vector<16x32xf32>
    %12 = arith.mulf %11, %11 : vector<16x32xf32>
    %cst_7 = arith.constant dense<0.000000e+00> : vector<16xf32>
    %13 = vector.multi_reduction <add>, %12, %cst_7 [1] : vector<16x32xf32> to vector<16xf32>
    %14 = vector.shape_cast %13 : vector<16xf32> to vector<16x1xf32>
    %cst_8 = arith.constant 3.200000e+01 : f32
    %15 = vector.broadcast %cst_8 : f32 to vector<16x1xf32>
    %16 = arith.divf %14, %15 : vector<16x1xf32>
    %17 = vector.broadcast %9 : vector<16x1xf32> to vector<16x32xf32>
    %18 = arith.subf %5, %17 : vector<16x32xf32>
    %cst_9 = arith.constant 9.99999974E-6 : f32
    %19 = vector.broadcast %cst_9 : f32 to vector<16x1xf32>
    %20 = arith.addf %16, %19 : vector<16x1xf32>
    %21 = math.rsqrt %20 : vector<16x1xf32>
    %22 = vector.broadcast %21 : vector<16x1xf32> to vector<16x32xf32>
    %23 = arith.mulf %18, %22 : vector<16x32xf32>
    %24 = vector.broadcast %2 : vector<1x32xf32> to vector<16x32xf32>
    %25 = arith.mulf %23, %24 : vector<16x32xf32>
    %26 = vector.broadcast %3 : vector<1x32xf32> to vector<16x32xf32>
    %27 = arith.addf %25, %26 : vector<16x32xf32>
    %28 = arith.truncf %27 : vector<16x32xf32> to vector<16x32xbf16>
    %c0_10 = arith.constant 0 : index
    %c0_11 = arith.constant 0 : index
    %29 = vector.load %arg7[%c0_10, %c0_11] : memref<32x64xbf16, #tpu.memory_space<vmem>>, vector<32x64xbf16>
    %cst_12 = arith.constant dense<0.000000e+00> : vector<16x64xf32>
    %30 = tpu.matmul %28, %29, %cst_12 {dimension_numbers = #tpu.dot_dimension_numbers<[1], [0], [0], [1], [0, 0, 1, 1], [], []>} : vector<16x32xbf16>, vector<32x64xbf16>, vector<16x64xf32> -> vector<16x64xf32>
    %c0_13 = arith.constant 0 : index
    %c0_14 = arith.constant 0 : index
    %31 = vector.load %arg8[%c0_13, %c0_14] : memref<1x64xf32, #tpu.memory_space<vmem>>, vector<1x64xf32>
    %32 = vector.broadcast %31 : vector<1x64xf32> to vector<16x64xf32>
    %33 = arith.addf %30, %32 : vector<16x64xf32>
    %34 = vector.extract_strided_slice %33 {offsets = [0, 0], sizes = [16, 32], strides = [1, 1]} : vector<16x64xf32> to vector<16x32xf32>
    %35 = arith.truncf %34 : vector<16x32xf32> to vector<16x32xbf16>
    %36 = vector.extract_strided_slice %33 {offsets = [0, 32], sizes = [16, 32], strides = [1, 1]} : vector<16x64xf32> to vector<16x32xf32>
    %37 = arith.truncf %36 : vector<16x32xf32> to vector<16x32xbf16>
    %c0_15 = arith.constant 0 : index
    %38 = arith.index_cast %1 : i32 to index
    %c0_16 = arith.constant 0 : index
    %39 = vector.load %arg2[%c0_15, %38, %c0_16] : memref<1x16x32xf32, #tpu.memory_space<vmem>>, vector<1x8x32xf32>
    %40 = vector.shape_cast %39 : vector<1x8x32xf32> to vector<8x32xf32>
    %cst_17 = arith.constant dense<0.000000e+00> : vector<8xf32>
    %41 = vector.multi_reduction <add>, %40, %cst_17 [1] : vector<8x32xf32> to vector<8xf32>
    %42 = vector.shape_cast %41 : vector<8xf32> to vector<8x1xf32>
    %cst_18 = arith.constant 3.200000e+01 : f32
    %43 = vector.broadcast %cst_18 : f32 to vector<8x1xf32>
    %44 = arith.divf %42, %43 : vector<8x1xf32>
    %45 = vector.broadcast %44 : vector<8x1xf32> to vector<8x32xf32>
    %46 = arith.subf %40, %45 : vector<8x32xf32>
    %47 = arith.mulf %46, %46 : vector<8x32xf32>
    %cst_19 = arith.constant dense<0.000000e+00> : vector<8xf32>
    %48 = vector.multi_reduction <add>, %47, %cst_19 [1] : vector<8x32xf32> to vector<8xf32>
    %49 = vector.shape_cast %48 : vector<8xf32> to vector<8x1xf32>
    %cst_20 = arith.constant 3.200000e+01 : f32
    %50 = vector.broadcast %cst_20 : f32 to vector<8x1xf32>
    %51 = arith.divf %49, %50 : vector<8x1xf32>
    %52 = vector.broadcast %44 : vector<8x1xf32> to vector<8x32xf32>
    %53 = arith.subf %40, %52 : vector<8x32xf32>
    %cst_21 = arith.constant 9.99999974E-6 : f32
    %54 = vector.broadcast %cst_21 : f32 to vector<8x1xf32>
    %55 = arith.addf %51, %54 : vector<8x1xf32>
    %56 = math.rsqrt %55 : vector<8x1xf32>
    %57 = vector.broadcast %56 : vector<8x1xf32> to vector<8x32xf32>
    %58 = arith.mulf %53, %57 : vector<8x32xf32>
    %59 = vector.broadcast %2 : vector<1x32xf32> to vector<8x32xf32>
    %60 = arith.mulf %58, %59 : vector<8x32xf32>
    %61 = vector.broadcast %3 : vector<1x32xf32> to vector<8x32xf32>
    %62 = arith.addf %60, %61 : vector<8x32xf32>
    %63 = arith.truncf %62 : vector<8x32xf32> to vector<8x32xbf16>
    %c0_22 = arith.constant 0 : index
    %c0_23 = arith.constant 0 : index
    %64 = vector.load %arg5[%c0_22, %c0_23] : memref<32x32xbf16, #tpu.memory_space<vmem>>, vector<32x32xbf16>
    %cst_24 = arith.constant dense<0.000000e+00> : vector<8x32xf32>
    %65 = tpu.matmul %63, %64, %cst_24 {dimension_numbers = #tpu.dot_dimension_numbers<[1], [0], [0], [1], [0, 0, 1, 1], [], []>} : vector<8x32xbf16>, vector<32x32xbf16>, vector<8x32xf32> -> vector<8x32xf32>
    %c0_25 = arith.constant 0 : index
    %c0_26 = arith.constant 0 : index
    %66 = vector.load %arg6[%c0_25, %c0_26] : memref<1x32xf32, #tpu.memory_space<vmem>>, vector<1x32xf32>
    %67 = vector.broadcast %66 : vector<1x32xf32> to vector<8x32xf32>
    %68 = arith.addf %65, %67 : vector<8x32xf32>
    %cst_27 = arith.constant 0.353553385 : f32
    %69 = vector.broadcast %cst_27 : f32 to vector<8x32xf32>
    %70 = arith.mulf %68, %69 : vector<8x32xf32>
    %71 = arith.truncf %70 : vector<8x32xf32> to vector<8x32xbf16>
    %72 = vector.extract_strided_slice %71 {offsets = [0, 0], sizes = [8, 8], strides = [1, 1]} : vector<8x32xbf16> to vector<8x8xbf16>
    %73 = vector.extract_strided_slice %35 {offsets = [0, 0], sizes = [16, 8], strides = [1, 1]} : vector<16x32xbf16> to vector<16x8xbf16>
    %cst_28 = arith.constant dense<0.000000e+00> : vector<8x16xf32>
    %74 = tpu.matmul %72, %73, %cst_28 {dimension_numbers = #tpu.dot_dimension_numbers<[1], [1], [0], [0], [0, 0, 1, 0], [], []>} : vector<8x8xbf16>, vector<16x8xbf16>, vector<8x16xf32> -> vector<8x16xf32>
    %cst_29 = arith.constant dense<0xFF800000> : vector<8xf32>
    %75 = vector.multi_reduction <maximumf>, %74, %cst_29 [1] : vector<8x16xf32> to vector<8xf32>
    %76 = vector.shape_cast %75 : vector<8xf32> to vector<8x1xf32>
    %77 = vector.broadcast %76 : vector<8x1xf32> to vector<8x16xf32>
    %78 = arith.subf %74, %77 : vector<8x16xf32>
    %79 = math.exp %78 : vector<8x16xf32>
    %cst_30 = arith.constant dense<0.000000e+00> : vector<8xf32>
    %80 = vector.multi_reduction <add>, %79, %cst_30 [1] : vector<8x16xf32> to vector<8xf32>
    %81 = vector.shape_cast %80 : vector<8xf32> to vector<8x1xf32>
    %82 = arith.truncf %79 : vector<8x16xf32> to vector<8x16xbf16>
    %83 = vector.extract_strided_slice %37 {offsets = [0, 0], sizes = [16, 8], strides = [1, 1]} : vector<16x32xbf16> to vector<16x8xbf16>
    %cst_31 = arith.constant dense<0.000000e+00> : vector<8x8xf32>
    %84 = tpu.matmul %82, %83, %cst_31 {dimension_numbers = #tpu.dot_dimension_numbers<[1], [0], [0], [1], [0, 0, 1, 1], [], []>} : vector<8x16xbf16>, vector<16x8xbf16>, vector<8x8xf32> -> vector<8x8xf32>
    %85 = tpu.reciprocal %81 {approx = true} : vector<8x1xf32> -> vector<8x1xf32>
    %86 = vector.broadcast %85 : vector<8x1xf32> to vector<8x8xf32>
    %87 = arith.mulf %84, %86 : vector<8x8xf32>
    %88 = arith.truncf %87 : vector<8x8xf32> to vector<8x8xbf16>
    %89 = vector.extract_strided_slice %71 {offsets = [0, 8], sizes = [8, 8], strides = [1, 1]} : vector<8x32xbf16> to vector<8x8xbf16>
    %90 = vector.extract_strided_slice %35 {offsets = [0, 8], sizes = [16, 8], strides = [1, 1]} : vector<16x32xbf16> to vector<16x8xbf16>
    %cst_32 = arith.constant dense<0.000000e+00> : vector<8x16xf32>
    %91 = tpu.matmul %89, %90, %cst_32 {dimension_numbers = #tpu.dot_dimension_numbers<[1], [1], [0], [0], [0, 0, 1, 0], [], []>} : vector<8x8xbf16>, vector<16x8xbf16>, vector<8x16xf32> -> vector<8x16xf32>
    %cst_33 = arith.constant dense<0xFF800000> : vector<8xf32>
    %92 = vector.multi_reduction <maximumf>, %91, %cst_33 [1] : vector<8x16xf32> to vector<8xf32>
    %93 = vector.shape_cast %92 : vector<8xf32> to vector<8x1xf32>
    %94 = vector.broadcast %93 : vector<8x1xf32> to vector<8x16xf32>
    %95 = arith.subf %91, %94 : vector<8x16xf32>
    %96 = math.exp %95 : vector<8x16xf32>
    %cst_34 = arith.constant dense<0.000000e+00> : vector<8xf32>
    %97 = vector.multi_reduction <add>, %96, %cst_34 [1] : vector<8x16xf32> to vector<8xf32>
    %98 = vector.shape_cast %97 : vector<8xf32> to vector<8x1xf32>
    %99 = arith.truncf %96 : vector<8x16xf32> to vector<8x16xbf16>
    %100 = vector.extract_strided_slice %37 {offsets = [0, 8], sizes = [16, 8], strides = [1, 1]} : vector<16x32xbf16> to vector<16x8xbf16>
    %cst_35 = arith.constant dense<0.000000e+00> : vector<8x8xf32>
    %101 = tpu.matmul %99, %100, %cst_35 {dimension_numbers = #tpu.dot_dimension_numbers<[1], [0], [0], [1], [0, 0, 1, 1], [], []>} : vector<8x16xbf16>, vector<16x8xbf16>, vector<8x8xf32> -> vector<8x8xf32>
    %102 = tpu.reciprocal %98 {approx = true} : vector<8x1xf32> -> vector<8x1xf32>
    %103 = vector.broadcast %102 : vector<8x1xf32> to vector<8x8xf32>
    %104 = arith.mulf %101, %103 : vector<8x8xf32>
    %105 = arith.truncf %104 : vector<8x8xf32> to vector<8x8xbf16>
    %106 = vector.extract_strided_slice %71 {offsets = [0, 16], sizes = [8, 8], strides = [1, 1]} : vector<8x32xbf16> to vector<8x8xbf16>
    %107 = vector.extract_strided_slice %35 {offsets = [0, 16], sizes = [16, 8], strides = [1, 1]} : vector<16x32xbf16> to vector<16x8xbf16>
    %cst_36 = arith.constant dense<0.000000e+00> : vector<8x16xf32>
    %108 = tpu.matmul %106, %107, %cst_36 {dimension_numbers = #tpu.dot_dimension_numbers<[1], [1], [0], [0], [0, 0, 1, 0], [], []>} : vector<8x8xbf16>, vector<16x8xbf16>, vector<8x16xf32> -> vector<8x16xf32>
    %cst_37 = arith.constant dense<0xFF800000> : vector<8xf32>
    %109 = vector.multi_reduction <maximumf>, %108, %cst_37 [1] : vector<8x16xf32> to vector<8xf32>
    %110 = vector.shape_cast %109 : vector<8xf32> to vector<8x1xf32>
    %111 = vector.broadcast %110 : vector<8x1xf32> to vector<8x16xf32>
    %112 = arith.subf %108, %111 : vector<8x16xf32>
    %113 = math.exp %112 : vector<8x16xf32>
    %cst_38 = arith.constant dense<0.000000e+00> : vector<8xf32>
    %114 = vector.multi_reduction <add>, %113, %cst_38 [1] : vector<8x16xf32> to vector<8xf32>
    %115 = vector.shape_cast %114 : vector<8xf32> to vector<8x1xf32>
    %116 = arith.truncf %113 : vector<8x16xf32> to vector<8x16xbf16>
    %117 = vector.extract_strided_slice %37 {offsets = [0, 16], sizes = [16, 8], strides = [1, 1]} : vector<16x32xbf16> to vector<16x8xbf16>
    %cst_39 = arith.constant dense<0.000000e+00> : vector<8x8xf32>
    %118 = tpu.matmul %116, %117, %cst_39 {dimension_numbers = #tpu.dot_dimension_numbers<[1], [0], [0], [1], [0, 0, 1, 1], [], []>} : vector<8x16xbf16>, vector<16x8xbf16>, vector<8x8xf32> -> vector<8x8xf32>
    %119 = tpu.reciprocal %115 {approx = true} : vector<8x1xf32> -> vector<8x1xf32>
    %120 = vector.broadcast %119 : vector<8x1xf32> to vector<8x8xf32>
    %121 = arith.mulf %118, %120 : vector<8x8xf32>
    %122 = arith.truncf %121 : vector<8x8xf32> to vector<8x8xbf16>
    %123 = vector.extract_strided_slice %71 {offsets = [0, 24], sizes = [8, 8], strides = [1, 1]} : vector<8x32xbf16> to vector<8x8xbf16>
    %124 = vector.extract_strided_slice %35 {offsets = [0, 24], sizes = [16, 8], strides = [1, 1]} : vector<16x32xbf16> to vector<16x8xbf16>
    %cst_40 = arith.constant dense<0.000000e+00> : vector<8x16xf32>
    %125 = tpu.matmul %123, %124, %cst_40 {dimension_numbers = #tpu.dot_dimension_numbers<[1], [1], [0], [0], [0, 0, 1, 0], [], []>} : vector<8x8xbf16>, vector<16x8xbf16>, vector<8x16xf32> -> vector<8x16xf32>
    %cst_41 = arith.constant dense<0xFF800000> : vector<8xf32>
    %126 = vector.multi_reduction <maximumf>, %125, %cst_41 [1] : vector<8x16xf32> to vector<8xf32>
    %127 = vector.shape_cast %126 : vector<8xf32> to vector<8x1xf32>
    %128 = vector.broadcast %127 : vector<8x1xf32> to vector<8x16xf32>
    %129 = arith.subf %125, %128 : vector<8x16xf32>
    %130 = math.exp %129 : vector<8x16xf32>
    %cst_42 = arith.constant dense<0.000000e+00> : vector<8xf32>
    %131 = vector.multi_reduction <add>, %130, %cst_42 [1] : vector<8x16xf32> to vector<8xf32>
    %132 = vector.shape_cast %131 : vector<8xf32> to vector<8x1xf32>
    %133 = arith.truncf %130 : vector<8x16xf32> to vector<8x16xbf16>
    %134 = vector.extract_strided_slice %37 {offsets = [0, 24], sizes = [16, 8], strides = [1, 1]} : vector<16x32xbf16> to vector<16x8xbf16>
    %cst_43 = arith.constant dense<0.000000e+00> : vector<8x8xf32>
    %135 = tpu.matmul %133, %134, %cst_43 {dimension_numbers = #tpu.dot_dimension_numbers<[1], [0], [0], [1], [0, 0, 1, 1], [], []>} : vector<8x16xbf16>, vector<16x8xbf16>, vector<8x8xf32> -> vector<8x8xf32>
    %136 = tpu.reciprocal %132 {approx = true} : vector<8x1xf32> -> vector<8x1xf32>
    %137 = vector.broadcast %136 : vector<8x1xf32> to vector<8x8xf32>
    %138 = arith.mulf %135, %137 : vector<8x8xf32>
    %139 = arith.truncf %138 : vector<8x8xf32> to vector<8x8xbf16>
    %140 = tpu.concatenate %88, %105, %122, %139 in 1 : vector<8x8xbf16>, vector<8x8xbf16>, vector<8x8xbf16>, vector<8x8xbf16> -> vector<8x32xbf16>
    %c0_44 = arith.constant 0 : index
    %c0_45 = arith.constant 0 : index
    %141 = vector.load %arg9[%c0_44, %c0_45] : memref<32x32xbf16, #tpu.memory_space<vmem>>, vector<32x32xbf16>
    %cst_46 = arith.constant dense<0.000000e+00> : vector<8x32xf32>
    %142 = tpu.matmul %140, %141, %cst_46 {dimension_numbers = #tpu.dot_dimension_numbers<[1], [0], [0], [1], [0, 0, 1, 1], [], []>} : vector<8x32xbf16>, vector<32x32xbf16>, vector<8x32xf32> -> vector<8x32xf32>
    %c0_47 = arith.constant 0 : index
    %c0_48 = arith.constant 0 : index
    %143 = vector.load %arg10[%c0_47, %c0_48] : memref<1x32xf32, #tpu.memory_space<vmem>>, vector<1x32xf32>
    %144 = vector.broadcast %143 : vector<1x32xf32> to vector<8x32xf32>
    %145 = arith.addf %142, %144 : vector<8x32xf32>
    %146 = arith.addf %40, %145 : vector<8x32xf32>
    %c0_49 = arith.constant 0 : index
    %c0_50 = arith.constant 0 : index
    %147 = vector.load %arg11[%c0_49, %c0_50] : memref<1x32xf32, #tpu.memory_space<vmem>>, vector<1x32xf32>
    %c0_51 = arith.constant 0 : index
    %c0_52 = arith.constant 0 : index
    %148 = vector.load %arg12[%c0_51, %c0_52] : memref<1x32xf32, #tpu.memory_space<vmem>>, vector<1x32xf32>
    %cst_53 = arith.constant dense<0.000000e+00> : vector<8xf32>
    %149 = vector.multi_reduction <add>, %146, %cst_53 [1] : vector<8x32xf32> to vector<8xf32>
    %150 = vector.shape_cast %149 : vector<8xf32> to vector<8x1xf32>
    %cst_54 = arith.constant 3.200000e+01 : f32
    %151 = vector.broadcast %cst_54 : f32 to vector<8x1xf32>
    %152 = arith.divf %150, %151 : vector<8x1xf32>
    %153 = vector.broadcast %152 : vector<8x1xf32> to vector<8x32xf32>
    %154 = arith.subf %146, %153 : vector<8x32xf32>
    %155 = arith.mulf %154, %154 : vector<8x32xf32>
    %cst_55 = arith.constant dense<0.000000e+00> : vector<8xf32>
    %156 = vector.multi_reduction <add>, %155, %cst_55 [1] : vector<8x32xf32> to vector<8xf32>
    %157 = vector.shape_cast %156 : vector<8xf32> to vector<8x1xf32>
    %cst_56 = arith.constant 3.200000e+01 : f32
    %158 = vector.broadcast %cst_56 : f32 to vector<8x1xf32>
    %159 = arith.divf %157, %158 : vector<8x1xf32>
    %160 = vector.broadcast %152 : vector<8x1xf32> to vector<8x32xf32>
    %161 = arith.subf %146, %160 : vector<8x32xf32>
    %cst_57 = arith.constant 9.99999974E-6 : f32
    %162 = vector.broadcast %cst_57 : f32 to vector<8x1xf32>
    %163 = arith.addf %159, %162 : vector<8x1xf32>
    %164 = math.rsqrt %163 : vector<8x1xf32>
    %165 = vector.broadcast %164 : vector<8x1xf32> to vector<8x32xf32>
    %166 = arith.mulf %161, %165 : vector<8x32xf32>
    %167 = vector.broadcast %147 : vector<1x32xf32> to vector<8x32xf32>
    %168 = arith.mulf %166, %167 : vector<8x32xf32>
    %169 = vector.broadcast %148 : vector<1x32xf32> to vector<8x32xf32>
    %170 = arith.addf %168, %169 : vector<8x32xf32>
    %171 = arith.truncf %170 : vector<8x32xf32> to vector<8x32xbf16>
    %c0_58 = arith.constant 0 : index
    %c0_59 = arith.constant 0 : index
    %172 = vector.load %arg13[%c0_58, %c0_59] : memref<32x128xbf16, #tpu.memory_space<vmem>>, vector<32x128xbf16>
    %cst_60 = arith.constant dense<0.000000e+00> : vector<8x128xf32>
    %173 = tpu.matmul %171, %172, %cst_60 {dimension_numbers = #tpu.dot_dimension_numbers<[1], [0], [0], [1], [0, 0, 1, 1], [], []>} : vector<8x32xbf16>, vector<32x128xbf16>, vector<8x128xf32> -> vector<8x128xf32>
    %c0_61 = arith.constant 0 : index
    %c0_62 = arith.constant 0 : index
    %174 = vector.load %arg14[%c0_61, %c0_62] : memref<1x128xf32, #tpu.memory_space<vmem>>, vector<1x128xf32>
    %175 = vector.broadcast %174 : vector<1x128xf32> to vector<8x128xf32>
    %176 = arith.addf %173, %175 : vector<8x128xf32>
    %cst_63 = arith.constant 5.000000e-01 : f32
    %177 = vector.broadcast %cst_63 : f32 to vector<8x128xf32>
    %178 = arith.mulf %177, %176 : vector<8x128xf32>
    %cst_64 = arith.constant 0.707106769 : f32
    %179 = vector.broadcast %cst_64 : f32 to vector<8x128xf32>
    %180 = arith.mulf %176, %179 : vector<8x128xf32>
    %181 = math.erf %180 : vector<8x128xf32>
    %cst_65 = arith.constant 1.000000e+00 : f32
    %182 = vector.broadcast %cst_65 : f32 to vector<8x128xf32>
    %183 = arith.addf %182, %181 : vector<8x128xf32>
    %184 = arith.mulf %178, %183 : vector<8x128xf32>
    %185 = arith.truncf %184 : vector<8x128xf32> to vector<8x128xbf16>
    %c0_66 = arith.constant 0 : index
    %c0_67 = arith.constant 0 : index
    %186 = vector.load %arg15[%c0_66, %c0_67] : memref<128x32xbf16, #tpu.memory_space<vmem>>, vector<128x32xbf16>
    %cst_68 = arith.constant dense<0.000000e+00> : vector<8x32xf32>
    %187 = tpu.matmul %185, %186, %cst_68 {dimension_numbers = #tpu.dot_dimension_numbers<[1], [0], [0], [1], [0, 0, 1, 1], [], []>} : vector<8x128xbf16>, vector<128x32xbf16>, vector<8x32xf32> -> vector<8x32xf32>
    %c0_69 = arith.constant 0 : index
    %c0_70 = arith.constant 0 : index
    %188 = vector.load %arg16[%c0_69, %c0_70] : memref<1x32xf32, #tpu.memory_space<vmem>>, vector<1x32xf32>
    %189 = vector.broadcast %188 : vector<1x32xf32> to vector<8x32xf32>
    %190 = arith.addf %187, %189 : vector<8x32xf32>
    %191 = arith.addf %146, %190 : vector<8x32xf32>
    %c0_71 = arith.constant 0 : index
    %c0_72 = arith.constant 0 : index
    %c0_73 = arith.constant 0 : index
    %192 = vector.load %arg17[%c0_71, %c0_72, %c0_73] : memref<1x8x32xf32, #tpu.memory_space<vmem>>, vector<1x8x32xf32>
    %193 = vector.shape_cast %192 : vector<1x8x32xf32> to vector<8x32xf32>
    %194 = vector.shape_cast %191 : vector<8x32xf32> to vector<1x8x32xf32>
    tpu.vector_store %arg17[%c0_71, %c0_72, %c0_73], %194 {strides = array<i32>} : memref<1x8x32xf32, #tpu.memory_space<vmem>>, vector<1x8x32xf32>,
    return
  }
  func.func @transform_0(%arg0: i32, %arg1: i32) -> (i32, i32, i32) {
    %c0_i32 = arith.constant 0 : i32
    %c0_i32_0 = arith.constant 0 : i32
    %c0_i32_1 = arith.constant 0 : i32
    return %arg0, %c0_i32, %c0_i32_0 : i32, i32, i32
  }
  func.func @transform_1(%arg0: i32, %arg1: i32) -> (i32, i32) {
    %c0_i32 = arith.constant 0 : i32
    %c0_i32_0 = arith.constant 0 : i32
    %c0_i32_1 = arith.constant 0 : i32
    return %c0_i32, %c0_i32_0 : i32, i32
  }
  func.func @transform_2(%arg0: i32, %arg1: i32) -> (i32, i32) {
    %c0_i32 = arith.constant 0 : i32
    %c0_i32_0 = arith.constant 0 : i32
    %c0_i32_1 = arith.constant 0 : i32
    return %c0_i32, %c0_i32_0 : i32, i32
  }
  func.func @transform_3(%arg0: i32, %arg1: i32) -> (i32, i32) {
    %c0_i32 = arith.constant 0 : i32
    %c0_i32_0 = arith.constant 0 : i32
    %c0_i32_1 = arith.constant 0 : i32
    return %c0_i32, %c0_i32_0 : i32, i32
  }
  func.func @transform_4(%arg0: i32, %arg1: i32) -> (i32, i32) {
    %c0_i32 = arith.constant 0 : i32
    %c0_i32_0 = arith.constant 0 : i32
    %c0_i32_1 = arith.constant 0 : i32
    return %c0_i32, %c0_i32_0 : i32, i32
  }
  func.func @transform_5(%arg0: i32, %arg1: i32) -> (i32, i32) {
    %c0_i32 = arith.constant 0 : i32
    %c0_i32_0 = arith.constant 0 : i32
    %c0_i32_1 = arith.constant 0 : i32
    return %c0_i32, %c0_i32_0 : i32, i32
  }
  func.func @transform_6(%arg0: i32, %arg1: i32) -> (i32, i32) {
    %c0_i32 = arith.constant 0 : i32
    %c0_i32_0 = arith.constant 0 : i32
    %c0_i32_1 = arith.constant 0 : i32
    return %c0_i32, %c0_i32_0 : i32, i32
  }
  func.func @transform_7(%arg0: i32, %arg1: i32) -> (i32, i32) {
    %c0_i32 = arith.constant 0 : i32
    %c0_i32_0 = arith.constant 0 : i32
    %c0_i32_1 = arith.constant 0 : i32
    return %c0_i32, %c0_i32_0 : i32, i32
  }
  func.func @transform_8(%arg0: i32, %arg1: i32) -> (i32, i32) {
    %c0_i32 = arith.constant 0 : i32
    %c0_i32_0 = arith.constant 0 : i32
    %c0_i32_1 = arith.constant 0 : i32
    return %c0_i32, %c0_i32_0 : i32, i32
  }
  func.func @transform_9(%arg0: i32, %arg1: i32) -> (i32, i32) {
    %c0_i32 = arith.constant 0 : i32
    %c0_i32_0 = arith.constant 0 : i32
    %c0_i32_1 = arith.constant 0 : i32
    return %c0_i32, %c0_i32_0 : i32, i32
  }
  func.func @transform_10(%arg0: i32, %arg1: i32) -> (i32, i32) {
    %c0_i32 = arith.constant 0 : i32
    %c0_i32_0 = arith.constant 0 : i32
    %c0_i32_1 = arith.constant 0 : i32
    return %c0_i32, %c0_i32_0 : i32, i32
  }
  func.func @transform_11(%arg0: i32, %arg1: i32) -> (i32, i32) {
    %c0_i32 = arith.constant 0 : i32
    %c0_i32_0 = arith.constant 0 : i32
    %c0_i32_1 = arith.constant 0 : i32
    return %c0_i32, %c0_i32_0 : i32, i32
  }
  func.func @transform_12(%arg0: i32, %arg1: i32) -> (i32, i32) {
    %c0_i32 = arith.constant 0 : i32
    %c0_i32_0 = arith.constant 0 : i32
    %c0_i32_1 = arith.constant 0 : i32
    return %c0_i32, %c0_i32_0 : i32, i32
  }
  func.func @transform_13(%arg0: i32, %arg1: i32) -> (i32, i32) {
    %c0_i32 = arith.constant 0 : i32
    %c0_i32_0 = arith.constant 0 : i32
    %c0_i32_1 = arith.constant 0 : i32
    return %c0_i32, %c0_i32_0 : i32, i32
  }
  func.func @transform_14(%arg0: i32, %arg1: i32) -> (i32, i32) {
    %c0_i32 = arith.constant 0 : i32
    %c0_i32_0 = arith.constant 0 : i32
    %c0_i32_1 = arith.constant 0 : i32
    return %c0_i32, %c0_i32_0 : i32, i32
  }
  func.func @transform_15(%arg0: i32, %arg1: i32) -> (i32, i32, i32) {
    %c0_i32 = arith.constant 0 : i32
    %c0_i32_0 = arith.constant 0 : i32
    return %arg0, %arg1, %c0_i32 : i32, i32, i32
  }
}

module attributes {stable_mosaic.version = 11 : i64} {
  func.func @block_kernel(%arg0: i32, %arg1: i32, %arg2: memref<1x16x32xf32, #tpu.memory_space<vmem>>, %arg3: memref<1x32xf32, #tpu.memory_space<vmem>>, %arg4: memref<1x32xf32, #tpu.memory_space<vmem>>, %arg5: memref<32x32xbf16, #tpu.memory_space<vmem>>, %arg6: memref<1x32xf32, #tpu.memory_space<vmem>>, %arg7: memref<32x64xbf16, #tpu.memory_space<vmem>>, %arg8: memref<1x64xf32, #tpu.memory_space<vmem>>, %arg9: memref<32x32xbf16, #tpu.memory_space<vmem>>, %arg10: memref<1x32xf32, #tpu.memory_space<vmem>>, %arg11: memref<1x32xf32, #tpu.memory_space<vmem>>, %arg12: memref<1x32xf32, #tpu.memory_space<vmem>>, %arg13: memref<32x128xbf16, #tpu.memory_space<vmem>>, %arg14: memref<1x128xf32, #tpu.memory_space<vmem>>, %arg15: memref<128x32xbf16, #tpu.memory_space<vmem>>, %arg16: memref<1x32xf32, #tpu.memory_space<vmem>>, %arg17: memref<1x8x32xf32, #tpu.memory_space<vmem>>) attributes {dimension_semantics = [#tpu.dimension_semantics<parallel>, #tpu.dimension_semantics<parallel>], iteration_bounds = array<i64: 2, 2>, scalar_prefetch = 0 : i64, scratch_operands = 0 : i64, tpu.core_type = #tpu.core_type<tc>, window_params = [{transform_indices = @transform_0, window_bounds = array<i64: 1, 16, 32>}, {pipeline_mode = #tpu.pipeline_mode<synchronous>, transform_indices = @transform_1, window_bounds = array<i64: 1, 32>}, {pipeline_mode = #tpu.pipeline_mode<synchronous>, transform_indices = @transform_2, window_bounds = array<i64: 1, 32>}, {pipeline_mode = #tpu.pipeline_mode<synchronous>, transform_indices = @transform_3, window_bounds = array<i64: 32, 32>}, {pipeline_mode = #tpu.pipeline_mode<synchronous>, transform_indices = @transform_4, window_bounds = array<i64: 1, 32>}, {pipeline_mode = #tpu.pipeline_mode<synchronous>, transform_indices = @transform_5, window_bounds = array<i64: 32, 64>}, {pipeline_mode = #tpu.pipeline_mode<synchronous>, transform_indices = @transform_6, window_bounds = array<i64: 1, 64>}, {pipeline_mode = #tpu.pipeline_mode<synchronous>, transform_indices = @transform_7, window_bounds = array<i64: 32, 32>}, {pipeline_mode = #tpu.pipeline_mode<synchronous>, transform_indices = @transform_8, window_bounds = array<i64: 1, 32>}, {pipeline_mode = #tpu.pipeline_mode<synchronous>, transform_indices = @transform_9, window_bounds = array<i64: 1, 32>}, {pipeline_mode = #tpu.pipeline_mode<synchronous>, transform_indices = @transform_10, window_bounds = array<i64: 1, 32>}, {pipeline_mode = #tpu.pipeline_mode<synchronous>, transform_indices = @transform_11, window_bounds = array<i64: 32, 128>}, {pipeline_mode = #tpu.pipeline_mode<synchronous>, transform_indices = @transform_12, window_bounds = array<i64: 1, 128>}, {pipeline_mode = #tpu.pipeline_mode<synchronous>, transform_indices = @transform_13, window_bounds = array<i64: 128, 32>}, {pipeline_mode = #tpu.pipeline_mode<synchronous>, transform_indices = @transform_14, window_bounds = array<i64: 1, 32>}, {transform_indices = @transform_15, window_bounds = array<i64: 1, 8, 32>}]} {
    %c8_i32 = arith.constant 8 : i32
    %0 = arith.muli %arg1, %c8_i32 : i32
    %1 = tpu.assume_multiple %0, 8 : i32
    %c0 = arith.constant 0 : index
    %c0_0 = arith.constant 0 : index
    %2 = vector.load %arg3[%c0, %c0_0] : memref<1x32xf32, #tpu.memory_space<vmem>>, vector<1x32xf32>
    %c0_1 = arith.constant 0 : index
    %c0_2 = arith.constant 0 : index
    %3 = vector.load %arg4[%c0_1, %c0_2] : memref<1x32xf32, #tpu.memory_space<vmem>>, vector<1x32xf32>
    %c0_3 = arith.constant 0 : index
    %c0_4 = arith.constant 0 : index
    %c0_5 = arith.constant 0 : index
    %4 = vector.load %arg2[%c0_3, %c0_4, %c0_5] : memref<1x16x32xf32, #tpu.memory_space<vmem>>, vector<1x16x32xf32>
    %5 = vector.shape_cast %4 : vector<1x16x32xf32> to vector<16x32xf32>
    %cst = arith.constant dense<0.000000e+00> : vector<16xf32>
    %6 = vector.multi_reduction <add>, %5, %cst [1] : vector<16x32xf32> to vector<16xf32>
    %7 = vector.shape_cast %6 : vector<16xf32> to vector<16x1xf32>
    %cst_6 = arith.constant 3.200000e+01 : f32
    %8 = vector.broadcast %cst_6 : f32 to vector<16x1xf32>
    %9 = arith.divf %7, %8 : vector<16x1xf32>
    %10 = vector.broadcast %9 : vector<16x1xf32> to vector<16x32xf32>
    %11 = arith.subf %5, %10 : vector<16x32xf32>
    %12 = arith.mulf %11, %11 : vector<16x32xf32>
    %cst_7 = arith.constant dense<0.000000e+00> : vector<16xf32>
    %13 = vector.multi_reduction <add>, %12, %cst_7 [1] : vector<16x32xf32> to vector<16xf32>
    %14 = vector.shape_cast %13 : vector<16xf32> to vector<16x1xf32>
    %cst_8 = arith.constant 3.200000e+01 : f32
    %15 = vector.broadcast %cst_8 : f32 to vector<16x1xf32>
    %16 = arith.divf %14, %15 : vector<16x1xf32>
    %17 = vector.broadcast %9 : vector<16x1xf32> to vector<16x32xf32>
    %18 = arith.subf %5, %17 : vector<16x32xf32>
    %cst_9 = arith.constant 9.99999974E-6 : f32
    %19 = vector.broadcast %cst_9 : f32 to vector<16x1xf32>
    %20 = arith.addf %16, %19 : vector<16x1xf32>
    %21 = math.rsqrt %20 : vector<16x1xf32>
    %22 = vector.broadcast %21 : vector<16x1xf32> to vector<16x32xf32>
    %23 = arith.mulf %18, %22 : vector<16x32xf32>
    %24 = vector.broadcast %2 : vector<1x32xf32> to vector<16x32xf32>
    %25 = arith.mulf %23, %24 : vector<16x32xf32>
    %26 = vector.broadcast %3 : vector<1x32xf32> to vector<16x32xf32>
    %27 = arith.addf %25, %26 : vector<16x32xf32>
    %28 = arith.truncf %27 : vector<16x32xf32> to vector<16x32xbf16>
    %c0_10 = arith.constant 0 : index
    %c0_11 = arith.constant 0 : index
    %29 = vector.load %arg7[%c0_10, %c0_11] : memref<32x64xbf16, #tpu.memory_space<vmem>>, vector<32x64xbf16>
    %cst_12 = arith.constant dense<0.000000e+00> : vector<16x64xf32>
    %30 = tpu.matmul %28, %29, %cst_12 {dimension_numbers = #tpu.dot_dimension_numbers<[1], [0], [0], [1], [0, 0, 1, 1], [], []>} : vector<16x32xbf16>, vector<32x64xbf16>, vector<16x64xf32> -> vector<16x64xf32>
    %c0_13 = arith.constant 0 : index
    %c0_14 = arith.constant 0 : index
    %31 = vector.load %arg8[%c0_13, %c0_14] : memref<1x64xf32, #tpu.memory_space<vmem>>, vector<1x64xf32>
    %32 = vector.broadcast %31 : vector<1x64xf32> to vector<16x64xf32>
    %33 = arith.addf %30, %32 : vector<16x64xf32>
    %34 = vector.extract_strided_slice %33 {offsets = [0, 0], sizes = [16, 32], strides = [1, 1]} : vector<16x64xf32> to vector<16x32xf32>
    %35 = arith.truncf %34 : vector<16x32xf32> to vector<16x32xbf16>
    %36 = vector.extract_strided_slice %33 {offsets = [0, 32], sizes = [16, 32], strides = [1, 1]} : vector<16x64xf32> to vector<16x32xf32>
    %37 = arith.truncf %36 : vector<16x32xf32> to vector<16x32xbf16>
    %c0_15 = arith.constant 0 : index
    %38 = arith.index_cast %1 : i32 to index
    %c0_16 = arith.constant 0 : index
    %39 = vector.load %arg2[%c0_15, %38, %c0_16] : memref<1x16x32xf32, #tpu.memory_space<vmem>>, vector<1x8x32xf32>
    %40 = vector.shape_cast %39 : vector<1x8x32xf32> to vector<8x32xf32>
    %cst_17 = arith.constant dense<0.000000e+00> : vector<8xf32>
    %41 = vector.multi_reduction <add>, %40, %cst_17 [1] : vector<8x32xf32> to vector<8xf32>
    %42 = vector.shape_cast %41 : vector<8xf32> to vector<8x1xf32>
    %cst_18 = arith.constant 3.200000e+01 : f32
    %43 = vector.broadcast %cst_18 : f32 to vector<8x1xf32>
    %44 = arith.divf %42, %43 : vector<8x1xf32>
    %45 = vector.broadcast %44 : vector<8x1xf32> to vector<8x32xf32>
    %46 = arith.subf %40, %45 : vector<8x32xf32>
    %47 = arith.mulf %46, %46 : vector<8x32xf32>
    %cst_19 = arith.constant dense<0.000000e+00> : vector<8xf32>
    %48 = vector.multi_reduction <add>, %47, %cst_19 [1] : vector<8x32xf32> to vector<8xf32>
    %49 = vector.shape_cast %48 : vector<8xf32> to vector<8x1xf32>
    %cst_20 = arith.constant 3.200000e+01 : f32
    %50 = vector.broadcast %cst_20 : f32 to vector<8x1xf32>
    %51 = arith.divf %49, %50 : vector<8x1xf32>
    %52 = vector.broadcast %44 : vector<8x1xf32> to vector<8x32xf32>
    %53 = arith.subf %40, %52 : vector<8x32xf32>
    %cst_21 = arith.constant 9.99999974E-6 : f32
    %54 = vector.broadcast %cst_21 : f32 to vector<8x1xf32>
    %55 = arith.addf %51, %54 : vector<8x1xf32>
    %56 = math.rsqrt %55 : vector<8x1xf32>
    %57 = vector.broadcast %56 : vector<8x1xf32> to vector<8x32xf32>
    %58 = arith.mulf %53, %57 : vector<8x32xf32>
    %59 = vector.broadcast %2 : vector<1x32xf32> to vector<8x32xf32>
    %60 = arith.mulf %58, %59 : vector<8x32xf32>
    %61 = vector.broadcast %3 : vector<1x32xf32> to vector<8x32xf32>
    %62 = arith.addf %60, %61 : vector<8x32xf32>
    %63 = arith.truncf %62 : vector<8x32xf32> to vector<8x32xbf16>
    %c0_22 = arith.constant 0 : index
    %c0_23 = arith.constant 0 : index
    %64 = vector.load %arg5[%c0_22, %c0_23] : memref<32x32xbf16, #tpu.memory_space<vmem>>, vector<32x32xbf16>
    %cst_24 = arith.constant dense<0.000000e+00> : vector<8x32xf32>
    %65 = tpu.matmul %63, %64, %cst_24 {dimension_numbers = #tpu.dot_dimension_numbers<[1], [0], [0], [1], [0, 0, 1, 1], [], []>} : vector<8x32xbf16>, vector<32x32xbf16>, vector<8x32xf32> -> vector<8x32xf32>
    %c0_25 = arith.constant 0 : index
    %c0_26 = arith.constant 0 : index
    %66 = vector.load %arg6[%c0_25, %c0_26] : memref<1x32xf32, #tpu.memory_space<vmem>>, vector<1x32xf32>
    %67 = vector.broadcast %66 : vector<1x32xf32> to vector<8x32xf32>
    %68 = arith.addf %65, %67 : vector<8x32xf32>
    %cst_27 = arith.constant 0.353553385 : f32
    %69 = vector.broadcast %cst_27 : f32 to vector<8x32xf32>
    %70 = arith.mulf %68, %69 : vector<8x32xf32>
    %71 = arith.truncf %70 : vector<8x32xf32> to vector<8x32xbf16>
    %72 = vector.extract_strided_slice %71 {offsets = [0, 0], sizes = [8, 8], strides = [1, 1]} : vector<8x32xbf16> to vector<8x8xbf16>
    %73 = vector.extract_strided_slice %35 {offsets = [0, 0], sizes = [16, 8], strides = [1, 1]} : vector<16x32xbf16> to vector<16x8xbf16>
    %cst_28 = arith.constant dense<0.000000e+00> : vector<8x16xf32>
    %74 = tpu.matmul %72, %73, %cst_28 {dimension_numbers = #tpu.dot_dimension_numbers<[1], [1], [0], [0], [0, 0, 1, 0], [], []>} : vector<8x8xbf16>, vector<16x8xbf16>, vector<8x16xf32> -> vector<8x16xf32>
    %cst_29 = arith.constant dense<0xFF800000> : vector<8xf32>
    %75 = vector.multi_reduction <maximumf>, %74, %cst_29 [1] : vector<8x16xf32> to vector<8xf32>
    %76 = vector.shape_cast %75 : vector<8xf32> to vector<8x1xf32>
    %77 = vector.broadcast %76 : vector<8x1xf32> to vector<8x16xf32>
    %78 = arith.subf %74, %77 : vector<8x16xf32>
    %79 = math.exp %78 : vector<8x16xf32>
    %cst_30 = arith.constant dense<0.000000e+00> : vector<8xf32>
    %80 = vector.multi_reduction <add>, %79, %cst_30 [1] : vector<8x16xf32> to vector<8xf32>
    %81 = vector.shape_cast %80 : vector<8xf32> to vector<8x1xf32>
    %82 = arith.truncf %79 : vector<8x16xf32> to vector<8x16xbf16>
    %83 = vector.extract_strided_slice %37 {offsets = [0, 0], sizes = [16, 8], strides = [1, 1]} : vector<16x32xbf16> to vector<16x8xbf16>
    %cst_31 = arith.constant dense<0.000000e+00> : vector<8x8xf32>
    %84 = tpu.matmul %82, %83, %cst_31 {dimension_numbers = #tpu.dot_dimension_numbers<[1], [0], [0], [1], [0, 0, 1, 1], [], []>} : vector<8x16xbf16>, vector<16x8xbf16>, vector<8x8xf32> -> vector<8x8xf32>
    %85 = tpu.reciprocal %81 {approx = true} : vector<8x1xf32> -> vector<8x1xf32>
    %86 = vector.broadcast %85 : vector<8x1xf32> to vector<8x8xf32>
    %87 = arith.mulf %84, %86 : vector<8x8xf32>
    %88 = arith.truncf %87 : vector<8x8xf32> to vector<8x8xbf16>
    %89 = vector.extract_strided_slice %71 {offsets = [0, 8], sizes = [8, 8], strides = [1, 1]} : vector<8x32xbf16> to vector<8x8xbf16>
    %90 = vector.extract_strided_slice %35 {offsets = [0, 8], sizes = [16, 8], strides = [1, 1]} : vector<16x32xbf16> to vector<16x8xbf16>
    %cst_32 = arith.constant dense<0.000000e+00> : vector<8x16xf32>
    %91 = tpu.matmul %89, %90, %cst_32 {dimension_numbers = #tpu.dot_dimension_numbers<[1], [1], [0], [0], [0, 0, 1, 0], [], []>} : vector<8x8xbf16>, vector<16x8xbf16>, vector<8x16xf32> -> vector<8x16xf32>
    %cst_33 = arith.constant dense<0xFF800000> : vector<8xf32>
    %92 = vector.multi_reduction <maximumf>, %91, %cst_33 [1] : vector<8x16xf32> to vector<8xf32>
    %93 = vector.shape_cast %92 : vector<8xf32> to vector<8x1xf32>
    %94 = vector.broadcast %93 : vector<8x1xf32> to vector<8x16xf32>
    %95 = arith.subf %91, %94 : vector<8x16xf32>
    %96 = math.exp %95 : vector<8x16xf32>
    %cst_34 = arith.constant dense<0.000000e+00> : vector<8xf32>
    %97 = vector.multi_reduction <add>, %96, %cst_34 [1] : vector<8x16xf32> to vector<8xf32>
    %98 = vector.shape_cast %97 : vector<8xf32> to vector<8x1xf32>
    %99 = arith.truncf %96 : vector<8x16xf32> to vector<8x16xbf16>
    %100 = vector.extract_strided_slice %37 {offsets = [0, 8], sizes = [16, 8], strides = [1, 1]} : vector<16x32xbf16> to vector<16x8xbf16>
    %cst_35 = arith.constant dense<0.000000e+00> : vector<8x8xf32>
    %101 = tpu.matmul %99, %100, %cst_35 {dimension_numbers = #tpu.dot_dimension_numbers<[1], [0], [0], [1], [0, 0, 1, 1], [], []>} : vector<8x16xbf16>, vector<16x8xbf16>, vector<8x8xf32> -> vector<8x8xf32>
    %102 = tpu.reciprocal %98 {approx = true} : vector<8x1xf32> -> vector<8x1xf32>
    %103 = vector.broadcast %102 : vector<8x1xf32> to vector<8x8xf32>
    %104 = arith.mulf %101, %103 : vector<8x8xf32>
    %105 = arith.truncf %104 : vector<8x8xf32> to vector<8x8xbf16>
    %106 = vector.extract_strided_slice %71 {offsets = [0, 16], sizes = [8, 8], strides = [1, 1]} : vector<8x32xbf16> to vector<8x8xbf16>
    %107 = vector.extract_strided_slice %35 {offsets = [0, 16], sizes = [16, 8], strides = [1, 1]} : vector<16x32xbf16> to vector<16x8xbf16>
    %cst_36 = arith.constant dense<0.000000e+00> : vector<8x16xf32>
    %108 = tpu.matmul %106, %107, %cst_36 {dimension_numbers = #tpu.dot_dimension_numbers<[1], [1], [0], [0], [0, 0, 1, 0], [], []>} : vector<8x8xbf16>, vector<16x8xbf16>, vector<8x16xf32> -> vector<8x16xf32>
    %cst_37 = arith.constant dense<0xFF800000> : vector<8xf32>
    %109 = vector.multi_reduction <maximumf>, %108, %cst_37 [1] : vector<8x16xf32> to vector<8xf32>
    %110 = vector.shape_cast %109 : vector<8xf32> to vector<8x1xf32>
    %111 = vector.broadcast %110 : vector<8x1xf32> to vector<8x16xf32>
    %112 = arith.subf %108, %111 : vector<8x16xf32>
    %113 = math.exp %112 : vector<8x16xf32>
    %cst_38 = arith.constant dense<0.000000e+00> : vector<8xf32>
    %114 = vector.multi_reduction <add>, %113, %cst_38 [1] : vector<8x16xf32> to vector<8xf32>
    %115 = vector.shape_cast %114 : vector<8xf32> to vector<8x1xf32>
    %116 = arith.truncf %113 : vector<8x16xf32> to vector<8x16xbf16>
    %117 = vector.extract_strided_slice %37 {offsets = [0, 16], sizes = [16, 8], strides = [1, 1]} : vector<16x32xbf16> to vector<16x8xbf16>
    %cst_39 = arith.constant dense<0.000000e+00> : vector<8x8xf32>
    %118 = tpu.matmul %116, %117, %cst_39 {dimension_numbers = #tpu.dot_dimension_numbers<[1], [0], [0], [1], [0, 0, 1, 1], [], []>} : vector<8x16xbf16>, vector<16x8xbf16>, vector<8x8xf32> -> vector<8x8xf32>
    %119 = tpu.reciprocal %115 {approx = true} : vector<8x1xf32> -> vector<8x1xf32>
    %120 = vector.broadcast %119 : vector<8x1xf32> to vector<8x8xf32>
    %121 = arith.mulf %118, %120 : vector<8x8xf32>
    %122 = arith.truncf %121 : vector<8x8xf32> to vector<8x8xbf16>
    %123 = vector.extract_strided_slice %71 {offsets = [0, 24], sizes = [8, 8], strides = [1, 1]} : vector<8x32xbf16> to vector<8x8xbf16>
    %124 = vector.extract_strided_slice %35 {offsets = [0, 24], sizes = [16, 8], strides = [1, 1]} : vector<16x32xbf16> to vector<16x8xbf16>
    %cst_40 = arith.constant dense<0.000000e+00> : vector<8x16xf32>
    %125 = tpu.matmul %123, %124, %cst_40 {dimension_numbers = #tpu.dot_dimension_numbers<[1], [1], [0], [0], [0, 0, 1, 0], [], []>} : vector<8x8xbf16>, vector<16x8xbf16>, vector<8x16xf32> -> vector<8x16xf32>
    %cst_41 = arith.constant dense<0xFF800000> : vector<8xf32>
    %126 = vector.multi_reduction <maximumf>, %125, %cst_41 [1] : vector<8x16xf32> to vector<8xf32>
    %127 = vector.shape_cast %126 : vector<8xf32> to vector<8x1xf32>
    %128 = vector.broadcast %127 : vector<8x1xf32> to vector<8x16xf32>
    %129 = arith.subf %125, %128 : vector<8x16xf32>
    %130 = math.exp %129 : vector<8x16xf32>
    %cst_42 = arith.constant dense<0.000000e+00> : vector<8xf32>
    %131 = vector.multi_reduction <add>, %130, %cst_42 [1] : vector<8x16xf32> to vector<8xf32>
    %132 = vector.shape_cast %131 : vector<8xf32> to vector<8x1xf32>
    %133 = arith.truncf %130 : vector<8x16xf32> to vector<8x16xbf16>
    %134 = vector.extract_strided_slice %37 {offsets = [0, 24], sizes = [16, 8], strides = [1, 1]} : vector<16x32xbf16> to vector<16x8xbf16>
    %cst_43 = arith.constant dense<0.000000e+00> : vector<8x8xf32>
    %135 = tpu.matmul %133, %134, %cst_43 {dimension_numbers = #tpu.dot_dimension_numbers<[1], [0], [0], [1], [0, 0, 1, 1], [], []>} : vector<8x16xbf16>, vector<16x8xbf16>, vector<8x8xf32> -> vector<8x8xf32>
    %136 = tpu.reciprocal %132 {approx = true} : vector<8x1xf32> -> vector<8x1xf32>
    %137 = vector.broadcast %136 : vector<8x1xf32> to vector<8x8xf32>
    %138 = arith.mulf %135, %137 : vector<8x8xf32>
    %139 = arith.truncf %138 : vector<8x8xf32> to vector<8x8xbf16>
    %140 = tpu.concatenate %88, %105, %122, %139 in 1 : vector<8x8xbf16>, vector<8x8xbf16>, vector<8x8xbf16>, vector<8x8xbf16> -> vector<8x32xbf16>
    %c0_44 = arith.constant 0 : index
    %c0_45 = arith.constant 0 : index
    %141 = vector.load %arg9[%c0_44, %c0_45] : memref<32x32xbf16, #tpu.memory_space<vmem>>, vector<32x32xbf16>
    %cst_46 = arith.constant dense<0.000000e+00> : vector<8x32xf32>
    %142 = tpu.matmul %140, %141, %cst_46 {dimension_numbers = #tpu.dot_dimension_numbers<[1], [0], [0], [1], [0, 0, 1, 1], [], []>} : vector<8x32xbf16>, vector<32x32xbf16>, vector<8x32xf32> -> vector<8x32xf32>
    %c0_47 = arith.constant 0 : index
    %c0_48 = arith.constant 0 : index
    %143 = vector.load %arg10[%c0_47, %c0_48] : memref<1x32xf32, #tpu.memory_space<vmem>>, vector<1x32xf32>
    %144 = vector.broadcast %143 : vector<1x32xf32> to vector<8x32xf32>
    %145 = arith.addf %142, %144 : vector<8x32xf32>
    %146 = arith.addf %40, %145 : vector<8x32xf32>
    %c0_49 = arith.constant 0 : index
    %c0_50 = arith.constant 0 : index
    %147 = vector.load %arg11[%c0_49, %c0_50] : memref<1x32xf32, #tpu.memory_space<vmem>>, vector<1x32xf32>
    %c0_51 = arith.constant 0 : index
    %c0_52 = arith.constant 0 : index
    %148 = vector.load %arg12[%c0_51, %c0_52] : memref<1x32xf32, #tpu.memory_space<vmem>>, vector<1x32xf32>
    %cst_53 = arith.constant dense<0.000000e+00> : vector<8xf32>
    %149 = vector.multi_reduction <add>, %146, %cst_53 [1] : vector<8x32xf32> to vector<8xf32>
    %150 = vector.shape_cast %149 : vector<8xf32> to vector<8x1xf32>
    %cst_54 = arith.constant 3.200000e+01 : f32
    %151 = vector.broadcast %cst_54 : f32 to vector<8x1xf32>
    %152 = arith.divf %150, %151 : vector<8x1xf32>
    %153 = vector.broadcast %152 : vector<8x1xf32> to vector<8x32xf32>
    %154 = arith.subf %146, %153 : vector<8x32xf32>
    %155 = arith.mulf %154, %154 : vector<8x32xf32>
    %cst_55 = arith.constant dense<0.000000e+00> : vector<8xf32>
    %156 = vector.multi_reduction <add>, %155, %cst_55 [1] : vector<8x32xf32> to vector<8xf32>
    %157 = vector.shape_cast %156 : vector<8xf32> to vector<8x1xf32>
    %cst_56 = arith.constant 3.200000e+01 : f32
    %158 = vector.broadcast %cst_56 : f32 to vector<8x1xf32>
    %159 = arith.divf %157, %158 : vector<8x1xf32>
    %160 = vector.broadcast %152 : vector<8x1xf32> to vector<8x32xf32>
    %161 = arith.subf %146, %160 : vector<8x32xf32>
    %cst_57 = arith.constant 9.99999974E-6 : f32
    %162 = vector.broadcast %cst_57 : f32 to vector<8x1xf32>
    %163 = arith.addf %159, %162 : vector<8x1xf32>
    %164 = math.rsqrt %163 : vector<8x1xf32>
    %165 = vector.broadcast %164 : vector<8x1xf32> to vector<8x32xf32>
    %166 = arith.mulf %161, %165 : vector<8x32xf32>
    %167 = vector.broadcast %147 : vector<1x32xf32> to vector<8x32xf32>
    %168 = arith.mulf %166, %167 : vector<8x32xf32>
    %169 = vector.broadcast %148 : vector<1x32xf32> to vector<8x32xf32>
    %170 = arith.addf %168, %169 : vector<8x32xf32>
    %171 = arith.truncf %170 : vector<8x32xf32> to vector<8x32xbf16>
    %c0_58 = arith.constant 0 : index
    %c0_59 = arith.constant 0 : index
    %172 = vector.load %arg13[%c0_58, %c0_59] : memref<32x128xbf16, #tpu.memory_space<vmem>>, vector<32x128xbf16>
    %cst_60 = arith.constant dense<0.000000e+00> : vector<8x128xf32>
    %173 = tpu.matmul %171, %172, %cst_60 {dimension_numbers = #tpu.dot_dimension_numbers<[1], [0], [0], [1], [0, 0, 1, 1], [], []>} : vector<8x32xbf16>, vector<32x128xbf16>, vector<8x128xf32> -> vector<8x128xf32>
    %c0_61 = arith.constant 0 : index
    %c0_62 = arith.constant 0 : index
    %174 = vector.load %arg14[%c0_61, %c0_62] : memref<1x128xf32, #tpu.memory_space<vmem>>, vector<1x128xf32>
    %175 = vector.broadcast %174 : vector<1x128xf32> to vector<8x128xf32>
    %176 = arith.addf %173, %175 : vector<8x128xf32>
    %cst_63 = arith.constant 5.000000e-01 : f32
    %177 = vector.broadcast %cst_63 : f32 to vector<8x128xf32>
    %178 = arith.mulf %177, %176 : vector<8x128xf32>
    %cst_64 = arith.constant 0.707106769 : f32
    %179 = vector.broadcast %cst_64 : f32 to vector<8x128xf32>
    %180 = arith.mulf %176, %179 : vector<8x128xf32>
    %181 = math.erf %180 : vector<8x128xf32>
    %cst_65 = arith.constant 1.000000e+00 : f32
    %182 = vector.broadcast %cst_65 : f32 to vector<8x128xf32>
    %183 = arith.addf %182, %181 : vector<8x128xf32>
    %184 = arith.mulf %178, %183 : vector<8x128xf32>
    %185 = arith.truncf %184 : vector<8x128xf32> to vector<8x128xbf16>
    %c0_66 = arith.constant 0 : index
    %c0_67 = arith.constant 0 : index
    %186 = vector.load %arg15[%c0_66, %c0_67] : memref<128x32xbf16, #tpu.memory_space<vmem>>, vector<128x32xbf16>
    %cst_68 = arith.constant dense<0.000000e+00> : vector<8x32xf32>
    %187 = tpu.matmul %185, %186, %cst_68 {dimension_numbers = #tpu.dot_dimension_numbers<[1], [0], [0], [1], [0, 0, 1, 1], [], []>} : vector<8x128xbf16>, vector<128x32xbf16>, vector<8x32xf32> -> vector<8x32xf32>
    %c0_69 = arith.constant 0 : index
    %c0_70 = arith.constant 0 : index
    %188 = vector.load %arg16[%c0_69, %c0_70] : memref<1x32xf32, #tpu.memory_space<vmem>>, vector<1x32xf32>
    %189 = vector.broadcast %188 : vector<1x32xf32> to vector<8x32xf32>
    %190 = arith.addf %187, %189 : vector<8x32xf32>
    %191 = arith.addf %146, %190 : vector<8x32xf32>
    %c0_71 = arith.constant 0 : index
    %c0_72 = arith.constant 0 : index
    %c0_73 = arith.constant 0 : index
    %192 = vector.load %arg17[%c0_71, %c0_72, %c0_73] : memref<1x8x32xf32, #tpu.memory_space<vmem>>, vector<1x8x32xf32>
    %193 = vector.shape_cast %192 : vector<1x8x32xf32> to vector<8x32xf32>
    %194 = vector.shape_cast %191 : vector<8x32xf32> to vector<1x8x32xf32>
    tpu.vector_store %arg17[%c0_71, %c0_72, %c0_73], %194 {strides = array<i32>} : memref<1x8x32xf32, #tpu.memory_space<vmem>>, vector<1x8x32xf32>,
    return
  }
  func.func @transform_0(%arg0: i32, %arg1: i32) -> (i32, i32, i32) {
    %c0_i32 = arith.constant 0 : i32
    %c0_i32_0 = arith.constant 0 : i32
    %c0_i32_1 = arith.constant 0 : i32
    return %arg0, %c0_i32, %c0_i32_0 : i32, i32, i32
  }
  func.func @transform_1(%arg0: i32, %arg1: i32) -> (i32, i32) {
    %c0_i32 = arith.constant 0 : i32
    %c0_i32_0 = arith.constant 0 : i32
    %c0_i32_1 = arith.constant 0 : i32
    return %c0_i32, %c0_i32_0 : i32, i32
  }
  func.func @transform_2(%arg0: i32, %arg1: i32) -> (i32, i32) {
    %c0_i32 = arith.constant 0 : i32
    %c0_i32_0 = arith.constant 0 : i32
    %c0_i32_1 = arith.constant 0 : i32
    return %c0_i32, %c0_i32_0 : i32, i32
  }
  func.func @transform_3(%arg0: i32, %arg1: i32) -> (i32, i32) {
    %c0_i32 = arith.constant 0 : i32
    %c0_i32_0 = arith.constant 0 : i32
    %c0_i32_1 = arith.constant 0 : i32
    return %c0_i32, %c0_i32_0 : i32, i32
  }
  func.func @transform_4(%arg0: i32, %arg1: i32) -> (i32, i32) {
    %c0_i32 = arith.constant 0 : i32
    %c0_i32_0 = arith.constant 0 : i32
    %c0_i32_1 = arith.constant 0 : i32
    return %c0_i32, %c0_i32_0 : i32, i32
  }
  func.func @transform_5(%arg0: i32, %arg1: i32) -> (i32, i32) {
    %c0_i32 = arith.constant 0 : i32
    %c0_i32_0 = arith.constant 0 : i32
    %c0_i32_1 = arith.constant 0 : i32
    return %c0_i32, %c0_i32_0 : i32, i32
  }
  func.func @transform_6(%arg0: i32, %arg1: i32) -> (i32, i32) {
    %c0_i32 = arith.constant 0 : i32
    %c0_i32_0 = arith.constant 0 : i32
    %c0_i32_1 = arith.constant 0 : i32
    return %c0_i32, %c0_i32_0 : i32, i32
  }
  func.func @transform_7(%arg0: i32, %arg1: i32) -> (i32, i32) {
    %c0_i32 = arith.constant 0 : i32
    %c0_i32_0 = arith.constant 0 : i32
    %c0_i32_1 = arith.constant 0 : i32
    return %c0_i32, %c0_i32_0 : i32, i32
  }
  func.func @transform_8(%arg0: i32, %arg1: i32) -> (i32, i32) {
    %c0_i32 = arith.constant 0 : i32
    %c0_i32_0 = arith.constant 0 : i32
    %c0_i32_1 = arith.constant 0 : i32
    return %c0_i32, %c0_i32_0 : i32, i32
  }
  func.func @transform_9(%arg0: i32, %arg1: i32) -> (i32, i32) {
    %c0_i32 = arith.constant 0 : i32
    %c0_i32_0 = arith.constant 0 : i32
    %c0_i32_1 = arith.constant 0 : i32
    return %c0_i32, %c0_i32_0 : i32, i32
  }
  func.func @transform_10(%arg0: i32, %arg1: i32) -> (i32, i32) {
    %c0_i32 = arith.constant 0 : i32
    %c0_i32_0 = arith.constant 0 : i32
    %c0_i32_1 = arith.constant 0 : i32
    return %c0_i32, %c0_i32_0 : i32, i32
  }
  func.func @transform_11(%arg0: i32, %arg1: i32) -> (i32, i32) {
    %c0_i32 = arith.constant 0 : i32
    %c0_i32_0 = arith.constant 0 : i32
    %c0_i32_1 = arith.constant 0 : i32
    return %c0_i32, %c0_i32_0 : i32, i32
  }
  func.func @transform_12(%arg0: i32, %arg1: i32) -> (i32, i32) {
    %c0_i32 = arith.constant 0 : i32
    %c0_i32_0 = arith.constant 0 : i32
    %c0_i32_1 = arith.constant 0 : i32
    return %c0_i32, %c0_i32_0 : i32, i32
  }
  func.func @transform_13(%arg0: i32, %arg1: i32) -> (i32, i32) {
    %c0_i32 = arith.constant 0 : i32
    %c0_i32_0 = arith.constant 0 : i32
    %c0_i32_1 = arith.constant 0 : i32
    return %c0_i32, %c0_i32_0 : i32, i32
  }
  func.func @transform_14(%arg0: i32, %arg1: i32) -> (i32, i32) {
    %c0_i32 = arith.constant 0 : i32
    %c0_i32_0 = arith.constant 0 : i32
    %c0_i32_1 = arith.constant 0 : i32
    return %c0_i32, %c0_i32_0 : i32, i32
  }
  func.func @transform_15(%arg0: i32, %arg1: i32) -> (i32, i32, i32) {
    %c0_i32 = arith.constant 0 : i32
    %c0_i32_0 = arith.constant 0 : i32
    return %arg0, %arg1, %c0_i32 : i32, i32, i32
  }
}

</mosaic_0001>

<bundles_post_ra>
// kernel: tpu_custom_call.1
= control target key start
LH: loop header
LB: loop body
LE: loop exit
PB: predicated region body
PF: predicated region fallthrough
CT: control target
= control target key end

     0   :  { %s2728_s0 = inlined_call_operand.vmem [shape: f32[2,16,32], index: 0, kind: input, shape index: {}]   ;;  %s2729_s1 = inlined_call_operand.vmem [shape: f32[1,32], index: 1, kind: input, shape index: {}]   ;;  %s2730_s2 = inlined_call_operand.vmem [shape: f32[1,32], index: 2, kind: input, shape index: {}]   ;;  %s2731_s3 = inlined_call_operand.vmem [shape: bf16[32,32], index: 3, kind: input, shape index: {}]   ;;  %s2732_s4 = inlined_call_operand.hbm [shape: f32[1,32], index: 4, kind: input, shape index: {}]   ;;  %s2733_s5 = inlined_call_operand.vmem [shape: bf16[32,64], index: 5, kind: input, shape index: {}]   ;;  %s2734_s6 = inlined_call_operand.hbm [shape: f32[1,64], index: 6, kind: input, shape index: {}]   ;;  %s2735_s7 = inlined_call_operand.vmem [shape: bf16[32,32], index: 7, kind: input, shape index: {}]   ;;  %s2736_s8 = inlined_call_operand.hbm [shape: f32[1,32], index: 8, kind: input, shape index: {}]   ;;  %s2737_s9 = inlined_call_operand.hbm [shape: f32[1,32], index: 9, kind: input, shape index: {}]   ;;  %s2738_s10 = inlined_call_operand.vmem [shape: f32[1,32], index: 10, kind: input, shape index: {}]   ;;  %s2739_s11 = inlined_call_operand.vmem [shape: bf16[32,128], index: 11, kind: input, shape index: {}]   ;;  %s2740_s12 = inlined_call_operand.vmem [shape: f32[1,128], index: 12, kind: input, shape index: {}]   ;;  %s2741_s13 = inlined_call_operand.vmem [shape: bf16[128,32], index: 13, kind: input, shape index: {}]   ;;  %s2742_s14 = inlined_call_operand.vmem [shape: f32[1,32], index: 14, kind: input, shape index: {}]   ;;  %s2743_s15 = inlined_call_operand.hbm [shape: f32[2,16,32], index: 15, kind: output, shape index: {}]  }
   0x1   :  { %2761 = sst [smem:[#allocation26_spill]] %s2740_s12 }
   0x2   :  { %2762 = sst [smem:[#allocation27_spill]] %s2742_s14 }
   0x3   :  { %2763 = sst [smem:[#allocation28_spill]] %s2743_s15 }
   0x4   :  { %20 = vsyncpa [#allocation3], 0 }
   0x5   :  { %21 = vsyncpa [#allocation6], 0 }
   0x6   :  { %22 = vsyncpa [#allocation9], 0 }
   0x7   :  { %23 = vsyncpa [#allocation4], 0 }
   0x8   :  { %25 = vsyncpa [#allocation4 + $0x1], 0  ;;  %s2308_s18 = smov 0   ;;  %s2310_s19 = smov 0  }
   0x9   :  { %s2312_s20 = smov 0   ;;  %s2314_s21 = smov 0  }
   0xa   :  { %s2316_s22 = smov 0   ;;  %s2318_s23 = smov 0  }
   0xb   :  { %s2320_s24 = smov 0   ;;  %s2322_s25 = smov 0  }
   0xc LB: > { %2764 = sst [smem:[#allocation15_spill]] %s2181_s18  ;;  %s1628_s26 = sadd.s32 4294967295, %s2209_s25   ;;  %s2209_s25 = sphi %s2322_s25, %s31_s25   ;;  %s2205_s24 = sphi %s2320_s24, %s2799_s24   ;;  %s2201_s23 = sphi %s2318_s23, %s2798_s23   ;;  %s2197_s22 = sphi %s2316_s22, %s2797_s22   ;;  %s2193_s21 = sphi %s2314_s21, %s2796_s21   ;;  %s2189_s20 = sphi %s2312_s20, %s2795_s20   ;;  %s2185_s19 = sphi %s2310_s19, %s2794_s19   ;;  %s2181_s18 = sphi %s2308_s18, %s2793_s18  }
   0xd   : > { %2765 = sst [smem:[#allocation16_spill]] %s2185_s19  ;;  %s1629_s27 = sadd.s32 4294967294, %s2209_s25  }
   0xe   : > { %2766 = sst [smem:[#allocation17_spill]] %s2189_s20  ;;  %s40_s28 = sadd.s32 1, %s2201_s23 }
   0xf   : > { %2767 = sst [smem:[#allocation18_spill]] %s2201_s23  ;;  %s43_s29 = sadd.s32 1, %s2205_s24 }
  0x10   : > { %2768 = sst [smem:[#allocation19_spill]] %s2205_s24  ;;  %p41_p0 = scmp.ge.s32.totalorder %s40_s28, 2 }
  0x11   : > { %2769 = sst [smem:[#allocation20_spill]] %s2209_s25  ;;  %s372_s30 = sadd.s32 1, %s2189_s20 }
  0x12   : > { %p382_p1 = scmp.ne.s32.totalorder %s2189_s20, %s2185_s19  ;;  %p383_p2 = scmp.eq.s32.totalorder %s1628_s26, 3 }
  0x13   : > { %s2801_s28 = smov (%p41_p0, %s40_s28), 0  ;;  %s2803_s29 = smov (!%p41_p0, %s43_s29), %s2205_s24 }
  0x14   : > { %2770 = sst [smem:[#allocation21_spill]] %s2801_s28  ;;  %s368_s16 = ssub.s32 %s2201_s23, %s2801_s28 }
  0x15   : > { %p2360_p3 = por %p383_p2, %p382_p1  ;;  %p45_p4 = scmp.ge.s32.totalorder %s2803_s29, 2 }
  0x16   : > { %p388_p5 = scmp.ne.s32.totalorder %s2185_s19, %s2181_s18  ;;  %p389_p6 = scmp.eq.s32.totalorder %s1629_s27, 3 }
  0x17   : > { %s2771_s17 = scalar_select %p2360_p3, 1, 0 }
  0x18   : > { %p1630_p7 = scmp.ge.s32.totalorder %s2209_s25, 1  ;;  %s2805_s29 = smov (%p45_p4, %s2803_s29), 0 }
  0x19   : > { %2772 = sst [smem:[#allocation22_spill]] %s2771_s17  ;;  %p2369_p8 = por %p389_p6, %p388_p5 }
  0x1a   : > { %2773 = sst [smem:[#allocation23_spill]] %s2805_s29  ;;  %p396_p9 = scmp.lt.s32.totalorder %s2209_s25, 5 }
  0x1b   : > { %s2774_s15 = scalar_select %p2369_p8, 1, 0 }
  0x1c   : > { %s367_s14 = ssub.s32 %s2205_s24, %s2805_s29  ;;  %p2376_p10 = pnand %p1630_p7, %p396_p9 }
  0x1d   : > { %2775 = sst [smem:[#allocation24_spill]] %s2774_s15  ;;  %s369_s12 = sor.u32 %s368_s16, %s367_s14 }
  0x1e   : > { %s2776_s28 = scalar_select %p2376_p10, 1, 0 }
  0x1f   : > { %p370_p11 = scmp.eq.s32.totalorder %s369_s12, 0  ;;  %p2380_p12 = scmp.eq.s32.totalorder %s1628_s26, 0 }
  0x20   : > { %p1843_p13 = pneg %p2376_p10  ;;  %s2211_s14 = smov [#allocation5]  }
  0x21   : > { %s2777_s23 = scalar_select %p2380_p12, 1, 0 }
  0x22   : > { %s2387_s27 = scalar_select %p370_p11, %s2189_s20, %s372_s30  }
  0x23   : > { %p2391_p0 = pnand %p2380_p12, %p1843_p13  ;;  %s432_s16 = sshll.u32 %s2211_s14, 4  ;;  %s433_s16 = int_to_ptr.vmem [resolvable:$true] %s432_s16 }
  0x24   : > { %2778 = sst [smem:[#allocation25_spill]] %s2387_s27  ;;  %s1991_s26 = scalar_lea.hbm %s2734_s6, 16 }
  0x25   : > { %p1992_p1 = scmp.ne.s32.totalorder %s2734_s6, %s1991_s26  ;;  %p2403_p2 = pneg %p2391_p0 }
  0x26   : > { %p1998_p6 = scmp.lt.u32.totalorder %s1991_s26, %s2734_s6 }
  0x27   : > { %p1994_p4 = pnand %p2403_p2, %p1992_p1 }
  0x29   : > { %p1995_p5 = pneg %p1994_p4 }
  0x2b   : > { %p2000_p7 = pnand %p1998_p6, %p1995_p5 }
  0x2d   : > { %2003 = shalt.err (!%p2000_p7)
}
  0x2e   : > { %s2004_s29 = scalar_lea.vmem %s433_s16, 16  ;;  %s2011_s18 = scalar_lea.vmem %s433_s16, 32 }
  0x2f   : > { %p2005_p9 = scmp.ne.s32.totalorder %s433_s16, %s2004_s29  ;;  %p2012_p8 = scmp.lt.s32.totalorder %s433_s16, %s433_s16 }
  0x30   : > { %p2013_p3 = scmp.lt.s32.totalorder %s2011_s18, %s2004_s29 }
  0x31   : > { %p2007_p11 = pnand %p2005_p9, %p2403_p2 }
  0x32   : > { %p2014_p12 = por %p2013_p3, %p2012_p8 }
  0x33   : > { %p2008_p13 = pneg %p2007_p11 }
  0x35   : > { %p2015_p10 = pnand %p2014_p12, %p2008_p13 }
  0x37   : > { %2018 = shalt.err (!%p2015_p10)
}
  0x38   : > { %1849 = dma.hbm_to_vmem [thread:$0]  (!%p2391_p0), %s2734_s6, 16, %s433_s16, [#allocation6]  }
  0x39   : > { %s2212_s27 = smov [#allocation2]   ;;  %s2213_s14 = smov [#allocation7]  }
  0x3a   : > { %s418_s26 = sshll.u32 %s2212_s27, 4  ;;  %s446_s20 = sshll.u32 %s2213_s14, 4  ;;  %s419_s26 = int_to_ptr.vmem [resolvable:$true] %s418_s26  ;;  %s2419_s20 = int_to_ptr.vmem [resolvable:$true] %s446_s20 }
  0x3b   : > { %s2019_s29 = scalar_lea.hbm %s2732_s4, 16 }
  0x3c   : > { %p2020_p3 = scmp.ne.s32.totalorder %s2732_s4, %s2019_s29  ;;  %p2026_p12 = scmp.lt.u32.totalorder %s2019_s29, %s2732_s4 }
  0x3e   : > { %p2022_p8 = pnand %p2020_p3, %p2403_p2 }
  0x40   : > { %p2023_p10 = pneg %p2022_p8 }
  0x42   : > { %p2028_p1 = pnand %p2026_p12, %p2023_p10 }
  0x44   : > { %2031 = shalt.err (!%p2028_p1)
}
  0x45   : > { %s2032_s12 = scalar_lea.vmem %s419_s26, 16  ;;  %s2039_s25 = scalar_lea.vmem %s419_s26, 32 }
  0x46   : > { %p2033_p4 = scmp.ne.s32.totalorder %s419_s26, %s2032_s12  ;;  %p2040_p7 = scmp.lt.s32.totalorder %s419_s26, %s419_s26 }
  0x47   : > { %p2041_p9 = scmp.lt.s32.totalorder %s2039_s25, %s2032_s12 }
  0x48   : > { %p2035_p5 = pnand %p2033_p4, %p2403_p2 }
  0x49   : > { %p2042_p11 = por %p2041_p9, %p2040_p7 }
  0x4a   : > { %p2036_p6 = pneg %p2035_p5 }
  0x4c   : > { %p2043_p13 = pnand %p2042_p11, %p2036_p6 }
  0x4e   : > { %2046 = shalt.err (!%p2043_p13)
}
  0x4f   : > { %1846 = dma.hbm_to_vmem [thread:$0]  (!%p2391_p0), %s2732_s4, 16, %s419_s26, [#allocation3]  }
  0x50   : > { %s2047_s29 = scalar_lea.hbm %s2736_s8, 16 }
  0x51   : > { %p2048_p3 = scmp.ne.s32.totalorder %s2736_s8, %s2047_s29  ;;  %p2054_p12 = scmp.lt.u32.totalorder %s2047_s29, %s2736_s8 }
  0x53   : > { %p2050_p8 = pnand %p2048_p3, %p2403_p2 }
  0x55   : > { %p2051_p10 = pneg %p2050_p8 }
  0x57   : > { %p2056_p1 = pnand %p2054_p12, %p2051_p10 }
  0x59   : > { %2059 = shalt.err (!%p2056_p1)
}
  0x5a   : > { %s2060_s26 = scalar_lea.vmem %s2419_s20, 16  ;;  %s2067_s25 = scalar_lea.vmem %s2419_s20, 32 }
  0x5b   : > { %p2061_p4 = scmp.ne.s32.totalorder %s2419_s20, %s2060_s26  ;;  %p2068_p7 = scmp.lt.s32.totalorder %s2419_s20, %s2419_s20 }
  0x5c   : > { %p2069_p9 = scmp.lt.s32.totalorder %s2067_s25, %s2060_s26 }
  0x5d   : > { %p2063_p5 = pnand %p2061_p4, %p2403_p2 }
  0x5e   : > { %p2070_p11 = por %p2069_p9, %p2068_p7 }
  0x5f   : > { %p2064_p6 = pneg %p2063_p5 }
  0x61   : > { %p2071_p13 = pnand %p2070_p11, %p2064_p6 }
  0x63   : > { %2074 = shalt.err (!%p2071_p13)
}
  0x64   : > { %1852 = dma.hbm_to_vmem [thread:$0]  (!%p2391_p0), %s2736_s8, 16, %s2419_s20, [#allocation6]  }
  0x65   : > { %s2214_s27 = smov [#allocation8]   ;;  %s2075_s24 = scalar_lea.hbm %s2737_s9, 16 }
  0x66   : > { %s457_s14 = sshll.u32 %s2214_s27, 4  ;;  %p2076_p3 = scmp.ne.s32.totalorder %s2737_s9, %s2075_s24  ;;  %s458_s14 = int_to_ptr.vmem [resolvable:$true] %s457_s14 }
  0x67   : > { %p2082_p12 = scmp.lt.u32.totalorder %s2075_s24, %s2737_s9 }
  0x68   : > { %p2078_p8 = pnand %p2076_p3, %p2403_p2 }
  0x6a   : > { %p2079_p10 = pneg %p2078_p8 }
  0x6c   : > { %p2084_p1 = pnand %p2082_p12, %p2079_p10 }
  0x6e   : > { %2087 = shalt.err (!%p2084_p1)
}
  0x6f   : > { %s2088_s20 = scalar_lea.vmem %s458_s14, 16  ;;  %s2095_s19 = scalar_lea.vmem %s458_s14, 32 }
  0x70   : > { %p2089_p4 = scmp.ne.s32.totalorder %s458_s14, %s2088_s20  ;;  %p2096_p7 = scmp.lt.s32.totalorder %s458_s14, %s458_s14 }
  0x71   : > { %p2097_p9 = scmp.lt.s32.totalorder %s2095_s19, %s2088_s20 }
  0x72   : > { %p2091_p5 = pnand %p2089_p4, %p2403_p2 }
  0x73   : > { %p2098_p11 = por %p2097_p9, %p2096_p7 }
  0x74   : > { %p2092_p6 = pneg %p2091_p5 }
  0x76   : > { %p2099_p13 = pnand %p2098_p11, %p2092_p6 }
  0x78   : > { %2102 = shalt.err (!%p2099_p13)
}
  0x79   : > { %1855 = dma.hbm_to_vmem [thread:$0]  (!%p2391_p0), %s2737_s9, 16, %s458_s14, [#allocation9]  }
  0x7a   : > { %p2781_p3 = scmp.ne.s32.totalorder %s2776_s28, 0 }
  0x7b   : > { %p2782_p8 = scmp.ne.s32.totalorder (!%p2781_p3), %s2777_s23, 0 }
  0x7c   : > { %493 = sbr.rel (%p2781_p3) target bundleno = 2536 (0x9e8), region = 80 }
  0x83   : > { %2164 = dma.done.wait (%p2782_p8), [#allocation3], 16  }
  0x84   : > { %2166 = vsyncadd (%p2782_p8), [#allocation3], 4294967280 }
  0x85   : > { %2168 = dma.done.wait (%p2782_p8), [#allocation6], 32  }
  0x86   : > { %2170 = vsyncadd (%p2782_p8), [#allocation6], 4294967264 }
  0x87   : > { %2172 = dma.done.wait (%p2782_p8), [#allocation9], 16  }
  0x88   : > { %2174 = vsyncadd (%p2782_p8), [#allocation9], 4294967280  ;;  %p553_p0 = scmp.lt.s32.totalorder %s2197_s22, 1  ;;  %s1644_s28 = sshll.u32 %s2193_s21, 3  ;;  %vm564_vm0 = vcmask 261120   ;;  %v1949_v21 = vld [vmem:[%s2733_s5] sm:$0xff]  }
  0x89   : > { %v2215_v22 = vmov 0.0   ;;  %v1950_v23 = vld [vmem:[%s2733_s5 + $0x8] sm:$0xff]   ;;  %vm2216_vm1 = vmmov 0   ;;  %v1645_v35 = vld [vmem:[%s2729_s1] ss:$0 sm:$0xff]  ;;  %vm763_vm2 = vcmask 64512  }
  0x8a   : > { %s554_s15 = scalar_select %p553_p0, %s2197_s22, 1  ;;  %1725 = vmatprep.subr.bf16.mxu1 %v2215_v22  ;;  %1753 = vmatprep.subr.bf16.mxu0 %v2215_v22  ;;  %v1646_v40 = vld [vmem:[%s2730_s2] ss:$0 sm:$0xff]  ;;  %v1952_v48 = vld [vmem:[%s2731_s3 + $0x8] sm:$0xff]   ;;  %v1647_v51 = vld [vmem:[#allocation5] ss:$0 sm:$0xff] }
  0x8b   : > { %1726 = vmatpush3.bf16.msra.mxu1 %v1949_v21  ;;  %1729 = vmatprep.mubr.msk.bf16.mxu1 %vm2216_vm1, %v2215_v22  ;;  %v1951_v45 = vld [vmem:[%s2731_s3] sm:$0xff]   ;;  %s2217_s14 = smov 120   ;;  %s2218_s29 = smov 104   ;;  %vm810_vm3 = vcmask 130048   ;;  %vm1213_vm4 = vcmask 195584  }
  0x8c   : > { %s1687_s30 = sshll.u32 %s554_s15, 4  ;;  %1727 = vmatprep.subr.bf16.mxu1 %v2215_v22  ;;  %1755 = vmatprep.mubr.msk.bf16.mxu0 %vm2216_vm1, %v2215_v22  ;;  %v1651_v59 = vld [vmem:[#allocation2] ss:$0 sm:$0xff]  ;;  %s2221_s23 = smov 80  }
  0x8d   : > { %s557_s18 = scalar_lea.vmem %s2728_s0, %s1687_s30  ;;  %s2222_s16 = smov 72  }
  0x8e   : > { %s677_s24 = scalar_lea.vmem %s557_s18, %s1644_s28  ;;  %v562_v0 = vld [vmem:[%s557_s18] sm:$0xff]  ;;  %v563_v2 = vld [vmem:[%s557_s18 + $0x8] sm:$0xff]  ;;  %s2219_s18 = smov 112  }
  0x8f   : > { %v2501_v1 = vld [vmem:[%s677_s24] sm:$0xff]  ;;  %v565_v3 = vsel %vm564_vm0, %v562_v0, 0.0  ;;  %v568_v5 = vsel %vm564_vm0, %v563_v2, 0.0  ;;  %1728 = vmatpush3.bf16.msra.mxu1 %v1950_v23  ;;  %s2220_s24 = smov 88   ;;  %s2223_s12 = smov 96  }
  0x90   : > { %v679_v4 = vsel %vm564_vm0, %v2501_v1, 0.0  ;;  %566 = vadd.xlane.f32.xlu0 %v565_v3  ;;  %1733 = vmatprep.subr.bf16.mxu1 %v2215_v22  ;;  %s2224_s17 = smov 8   ;;  %s2225_s27 = smov 16  }
  0x91   : > { %680 = vadd.xlane.f32.xlu1 %v679_v4  ;;  %s2226_s15 = smov 24   ;;  %s2784_s26 = sld [smem:[#allocation26_spill]] }
  0x92   : > { %s1683_s19 = sshll.u32 %s2197_s22, 1  ;;  %s2785_s28 = sld [smem:[#allocation27_spill]] }
  0x93   : > { %s2786_s30 = sld [smem:[#allocation22_spill]] }
  0x94   : > { %569 = vadd.xlane.f32.xlu0 %v568_v5 }
  0x99   : > { %p2788_p10 = scmp.ne.s32.totalorder %s2786_s30, 0 }
 0x11d   : > { %v567_v6 = vpop.xlane.xlu0 %566 }
 0x11e   : > { %v681_v7 = vpop.xlane.xlu1 %680  ;;  %v572_v8 = vmul.f32 0.03125, %v567_v6 }
 0x11f   : > { %v682_v9 = vmul.f32 0.03125, %v681_v7 }
 0x120   : > { %v574_v10 = vsub.f32 %v562_v0, %v572_v8 }
 0x121   : > { %v683_v11 = vsub.f32 %v2501_v1, %v682_v9  ;;  %v570_v12 = vpop.xlane.xlu0 %569 }
 0x122   : > { %v573_v13 = vmul.f32 0.03125, %v570_v12  ;;  %v576_v14 = vmul.f32 %v574_v10, %v574_v10 }
 0x123   : > { %v684_v15 = vmul.f32 %v683_v11, %v683_v11 }
 0x124   : > { %v575_v16 = vsub.f32 %v563_v2, %v573_v13  ;;  %v578_v17 = vsel %vm564_vm0, %v576_v14, 0.0 }
 0x125   : > { %579 = vadd.xlane.f32.xlu1 %v578_v17  ;;  %v685_v18 = vsel %vm564_vm0, %v684_v15, 0.0 }
 0x126   : > { %v577_v19 = vmul.f32 %v575_v16, %v575_v16 }
 0x128   : > { %v581_v20 = vsel %vm564_vm0, %v577_v19, 0.0 }
 0x129   : > { %686 = vadd.xlane.f32.xlu1 %v685_v18  ;;  %582 = vadd.xlane.f32.xlu0 %v581_v20 }
 0x1b2   : > { %v580_v24 = vpop.xlane.xlu1 %579 }
 0x1b3   : > { %v584_v25 = vmul.f32 0.03125, %v580_v24 }
 0x1b5   : > { %v586_v26 = vadd.f32 1e-05, %v584_v25 }
 0x1b6   : > { %v687_v27 = vpop.xlane.xlu1 %686  ;;  %v583_v28 = vpop.xlane.xlu0 %582 }
 0x1b7   : > { %1965 = vrsqrt.f32 %v586_v26  ;;  %v688_v29 = vmul.f32 0.03125, %v687_v27  ;;  %v585_v30 = vmul.f32 0.03125, %v583_v28 }
 0x1b9   : > { %v689_v31 = vadd.f32 1e-05, %v688_v29  ;;  %v587_v32 = vadd.f32 1e-05, %v585_v30 }
 0x1bb   : > { %1967 = vrsqrt.f32 %v689_v31 }
 0x1bc   : > { %1969 = vrsqrt.f32 %v587_v32 }
 0x1c1   : > { %v1966_v33 = vpop.eup %1965 }
 0x1c2   : > { %v590_v34 = vmul.f32 %v1966_v33, %v574_v10 }
 0x1c4   : > { %v598_v39 = vmul.f32 %v1645_v35, %v590_v34 }
 0x1c5   : > { %v1968_v36 = vpop.eup %1967 }
 0x1c6   : > { %v1970_v37 = vpop.eup %1969  ;;  %v691_v41 = vmul.f32 %v1968_v36, %v683_v11  ;;  %v606_v43 = vadd.f32 %v1646_v40, %v598_v39 }
 0x1c7   : > { %v591_v38 = vmul.f32 %v1970_v37, %v575_v16 }
 0x1c8   : > { %v692_v47 = vmul.f32 %v1645_v35, %v691_v41 }
 0x1c9   : > { %v599_v42 = vmul.f32 %v1645_v35, %v591_v38 }
 0x1ca   : > { %v693_v49 = vadd.f32 %v1646_v40, %v692_v47 }
 0x1cb   : > { %v607_v44 = vadd.f32 %v1646_v40, %v599_v42 }
 0x1cc   : > { %v694_v50 = vpack.c.bf16 %v693_v49, %v693_v49 }
 0x1cd   : > { %v608_v46 = vpack.c.bf16 %v607_v44, %v606_v43 }
 0x1cf   : > { %1730 = vmatmul.mubr.msk.bf16.vlgmr.msra.gmra.mrb[0].mxu1 %vm564_vm0, %v608_v46 }
 0x1d0   : > { %1734 = vmatpush3.bf16.msra.mxu1 %v1951_v45  ;;  %1737 = vmatprep.mubr.msk.bf16.mxu1 %vm2216_vm1, %v2215_v22 }
 0x1d1   : > { %1735 = vmatprep.subr.bf16.mxu1 %v2215_v22 }
 0x1d4   : > { %1736 = vmatpush3.bf16.msra.mxu1 %v1952_v48 }
 0x1d5   : > { %1741 = vmatprep.subr.bf16.mxu1 %v2215_v22 }
 0x1d7   : > { %1738 = vmatmul.mubr.msk.bf16.vlgmr.msra.gmra.mrb[4].mxu1 %vm564_vm0, %v694_v50 }
 0x1d8   : > { %1743 = vmatprep.mubr.msk.bf16.mxu1 %vm2216_vm1, %v2215_v22 }
 0x2a2   : > { %v669_v52 = vpop.f32.mrb[0].mxu1 }
 0x2a3   : > { %v1731_v53 = vpop.f32.mrb[1].mxu1  ;;  %v670_v55 = vadd.f32 %v1647_v51, %v669_v52 }
 0x2a4   : > { %v672_v54 = vpop.f32.mrb[2].mxu1 }
 0x2a5   : > { %v673_v56 = vadd.f32 %v1647_v51, %v672_v54  ;;  %v1732_v57 = vpop.f32.mrb[3].mxu1 }
 0x2a7   : > { %v2545_v58 = vpack.c.bf16 %v673_v56, %v670_v55 }
 0x2a9   : > { %874 = vrot.lane.b32.xlu0 %v2545_v58, %s2217_s14  ;;  %v768_v60 = vsel %vm763_vm2, %v2545_v58, 0 }
 0x2aa   : > { %v755_v61 = vpop.f32.mrb[4].mxu1  ;;  %1742 = vmatpush3.bf16.xpose.msra.mxu1 %v768_v60 }
 0x2ab   : > { %v756_v62 = vadd.f32 %v1651_v59, %v755_v61  ;;  %v1739_v63 = vpop.f32.mrb[5].mxu1  ;;  %1747 = vmatprep.subr.bf16.mxu1 %v2215_v22 }
 0x2ac   : > { %v758_v0 = vpop.f32.mrb[6].mxu1 }
 0x2ad   : > { %v761_v2 = vmul.f32 0.35355338, %v756_v62  ;;  %1092 = vrot.lane.b32.xlu0 %v2545_v58, %s2218_s29  ;;  %v1740_v3 = vpop.f32.mrb[7].mxu1 }
 0x2af   : > { %v762_v4 = vpack.c.bf16 %v761_v2, %v761_v2 }
 0x2b1   : > { %872 = vrot.lane.b32.xlu1 %v762_v4, %s2217_s14  ;;  %1744 = vmatmul.mubr.msk.bf16.vlgmr.msra.gmra.mrb[8].mxu1 %vm763_vm2, %v762_v4 }
 0x2b2   : > { %1749 = vmatprep.mubr.msk.bf16.mxu1 %vm2216_vm1, %v2215_v22 }
 0x2b5   : > { %983 = vrot.lane.b32.xlu1 %v2545_v58, %s2219_s18 }
 0x2b9   : > { %981 = vrot.lane.b32.xlu1 %v762_v4, %s2219_s18 }
 0x2bd   : > { %1090 = vrot.lane.b32.xlu1 %v762_v4, %s2218_s29 }
 0x31b   : > { %v875_v5 = vpop.permute.xlu0 %874 }
 0x31c   : > { %v880_v6 = vsel %vm763_vm2, %v875_v5, 0 }
 0x31d   : > { %1754 = vmatpush3.bf16.xpose.msra.mxu0 %v880_v6 }
 0x31e   : > { %1765 = vmatprep.subr.bf16.mxu0 %v2215_v22 }
 0x31f   : > { %v1093_v10 = vpop.permute.xlu0 %1092 }
 0x320   : > { %v1098_v12 = vsel %vm763_vm2, %v1093_v10, 0 }
 0x323   : > { %v873_v7 = vpop.permute.xlu1 %872 }
 0x324   : > { %1756 = vmatmul.mubr.msk.bf16.vlgmr.msra.gmra.mrb[0].mxu0 %vm763_vm2, %v873_v7 }
 0x325   : > { %1767 = vmatprep.mubr.msk.bf16.mxu0 %vm2216_vm1, %v2215_v22 }
 0x327   : > { %v984_v8 = vpop.permute.xlu1 %983 }
 0x328   : > { %v989_v9 = vsel %vm763_vm2, %v984_v8, 0  ;;  %v1953_v8 = vld [vmem:[%s2735_s7] sm:$0xff]  }
 0x329   : > { %1766 = vmatpush3.bf16.xpose.msra.mxu0 %v989_v9 }
 0x32a   : > { %1777 = vmatprep.subr.bf16.mxu0 %v2215_v22 }
 0x32b   : > { %v982_v11 = vpop.permute.xlu1 %981 }
 0x32f   : > { %v1091_v13 = vpop.permute.xlu1 %1090 }
 0x330   : > { %1768 = vmatmul.mubr.msk.bf16.vlgmr.msra.gmra.mrb[4].mxu0 %vm763_vm2, %v982_v11 }
 0x331   : > { %1778 = vmatpush3.bf16.xpose.msra.mxu0 %v1098_v12  ;;  %1779 = vmatprep.mubr.msk.bf16.mxu0 %vm2216_vm1, %v2215_v22  ;;  %v1954_v12 = vld [vmem:[%s2735_s7 + $0x8] sm:$0xff]  }
 0x332   : > { %1789 = vmatprep.subr.bf16.mxu0 %v2215_v22 }
 0x338   : > { %1780 = vmatmul.mubr.msk.bf16.vlgmr.msra.gmra.mrb[8].mxu0 %vm763_vm2, %v1091_v13 }
 0x339   : > { %1793 = vmatprep.mubr.msk.bf16.mxu0 %vm2216_vm1, %v2215_v22  ;;  %1790 = vmatpush3.bf16.msra.mxu0 %v1953_v8  ;;  %v1963_v8 = vld [vmem:[%s2741_s13 + $0x30] sm:$0xff]  }
 0x33a   : > { %1791 = vmatprep.subr.bf16.mxu0 %v2215_v22 }
 0x33d   : > { %1792 = vmatpush3.bf16.msra.mxu0 %v1954_v12 }
 0x33e   : > { %1805 = vmatprep.subr.bf16.mxu0 %v2215_v22 }
 0x384   : > { %v804_v14 = vpop.f32.mrb[8].mxu1 }
 0x385   : > { %v1745_v15 = vpop.f32.mrb[9].mxu1  ;;  %v811_v16 = vsel %vm810_vm3, %v804_v14, -inf }
 0x386   : > { %812 = vmax.xlane.f32.xlu0 %v811_v16  ;;  %v807_v17 = vpop.f32.mrb[10].mxu1 }
 0x387   : > { %v1746_v18 = vpop.f32.mrb[11].mxu1 }
 0x3f7   : > { %v916_v19 = vpop.f32.mrb[0].mxu0 }
 0x3f8   : > { %v1757_v20 = vpop.f32.mrb[1].mxu0  ;;  %v922_v21 = vsel %vm810_vm3, %v916_v19, -inf }
 0x3f9   : > { %923 = vmax.xlane.f32.xlu1 %v922_v21  ;;  %v919_v23 = vpop.f32.mrb[2].mxu0 }
 0x3fa   : > { %v1758_v24 = vpop.f32.mrb[3].mxu0 }
 0x403   : > { %v1025_v25 = vpop.f32.mrb[4].mxu0 }
 0x404   : > { %v1769_v26 = vpop.f32.mrb[5].mxu0  ;;  %v1031_v27 = vsel %vm810_vm3, %v1025_v25, -inf }
 0x405   : > { %v1028_v28 = vpop.f32.mrb[6].mxu0  ;;  %1032 = vmax.xlane.f32.xlu0 %v1031_v27 }
 0x406   : > { %v1770_v29 = vpop.f32.mrb[7].mxu0 }
 0x40a   : > { %932 = vrot.lane.b32.xlu1 %v2545_v58, %s2220_s24 }
 0x40b   : > { %v1134_v30 = vpop.f32.mrb[8].mxu0 }
 0x40c   : > { %v1781_v31 = vpop.f32.mrb[9].mxu0  ;;  %v1140_v32 = vsel %vm810_vm3, %v1134_v30, -inf }
 0x40d   : > { %v1137_v33 = vpop.f32.mrb[10].mxu0  ;;  %1141 = vmax.xlane.f32.xlu0 %v1140_v32 }
 0x40e   : > { %1041 = vrot.lane.b32.xlu1 %v2545_v58, %s2221_s23  ;;  %v1782_v34 = vpop.f32.mrb[11].mxu0  ;;  %s2783_s23 = sld [smem:[#allocation16_spill]] }
 0x412   : > { %1150 = vrot.lane.b32.xlu1 %v2545_v58, %s2222_s16  ;;  %s2787_s16 = sld [smem:[#allocation28_spill]] }
 0x413   : > { %v813_v37 = vpop.xlane.xlu0 %812 }
 0x414   : > { %v814_v39 = vsub.f32 %v804_v14, %v813_v37  ;;  %s550_s25 = sand.u32 1, %s2783_s23  }
 0x415   : > { %s1641_s20 = sshll.u32 %s550_s25, 3 }
 0x416   : > { %v815_v40 = vmul.f32 1.442695, %v814_v39  ;;  %s552_s29 = scalar_lea.vmem [#allocation10], %s1641_s20 }
 0x417   : > { %s1513_s18 = sshll.u32 %s552_s29, 4  ;;  %s2676_s18 = int_to_ptr.vmem [resolvable:$true] %s1513_s18 }
 0x423   : > { %822 = vrot.lane.b32.xlu0 %v2545_v58, %s2223_s12  ;;  %s2103_s12 = scalar_lea.vmem %s2676_s18, 128 }
 0x424   : > { %p2104_p2 = scmp.ne.s32.totalorder %s2676_s18, %s2103_s12 }
 0x426   : > { %p2105_p12 = pnand %p2104_p2, %p2788_p10 }
 0x428   : > { %p2106_p1 = pneg %p2105_p12 }
 0x486   : > { %v924_v35 = vpop.xlane.xlu1 %923 }
 0x487   : > { %v925_v36 = vsub.f32 %v916_v19, %v924_v35 }
 0x489   : > { %v926_v38 = vmul.f32 1.442695, %v925_v36 }
 0x48a   : > { %v933_v53 = vpop.permute.xlu1 %932 }
 0x48b   : > { %1971 = vpow2.f32 %v926_v38 }
 0x48c   : > { %1973 = vpow2.f32 %v815_v40 }
 0x48e   : > { %v1042_v57 = vpop.permute.xlu1 %1041 }
 0x492   : > { %v1033_v41 = vpop.xlane.xlu0 %1032  ;;  %v1151_v61 = vpop.permute.xlu1 %1150 }
 0x493   : > { %v1034_v42 = vsub.f32 %v1025_v25, %v1033_v41  ;;  %v1663_v41 = vld [vmem:[#allocation7] ss:$0 sm:$0xff] }
 0x495   : > { %v1972_v43 = vpop.eup %1971  ;;  %v1035_v44 = vmul.f32 1.442695, %v1034_v42 }
 0x496   : > { %v928_v45 = vsel %vm810_vm3, %v1972_v43, 0.0  ;;  %v1974_v48 = vpop.eup %1973  ;;  %v931_v55 = vpack.c.bf16 %v1972_v43, %v1972_v43 }
 0x497   : > { %1975 = vpow2.f32 %v1035_v44  ;;  %929 = vadd.xlane.f32.xlu0 %v928_v45  ;;  %v820_v51 = vpack.c.bf16 %v1974_v48, %v1974_v48  ;;  %v817_v59 = vsel %vm810_vm3, %v1974_v48, 0.0 }
 0x49a   : > { %v1142_v46 = vpop.xlane.xlu0 %1141 }
 0x49b   : > { %v1143_v47 = vsub.f32 %v1134_v30, %v1142_v46 }
 0x49d   : > { %v1144_v49 = vmul.f32 1.442695, %v1143_v47 }
 0x49e   : > { %v823_v50 = vpop.permute.xlu0 %822 }
 0x49f   : > { %1977 = vpow2.f32 %v1144_v49  ;;  %1748 = vmatpush3.bf16.msra.mxu1 %v823_v50 }
 0x4a0   : > { %1759 = vmatprep.subr.bf16.mxu1 %v2215_v22 }
 0x4a1   : > { %v1976_v52 = vpop.eup %1975 }
 0x4a2   : > { %1750 = vmatmul.mubr.msk.bf16.vlgmr.msra.gmra.mrb[12].mxu1 %vm810_vm3, %v820_v51  ;;  %v1037_v54 = vsel %vm810_vm3, %v1976_v52, 0.0  ;;  %v1040_v60 = vpack.c.bf16 %v1976_v52, %v1976_v52 }
 0x4a3   : > { %1038 = vadd.xlane.f32.xlu1 %v1037_v54  ;;  %1760 = vmatpush3.bf16.msra.mxu1 %v933_v53  ;;  %v1955_v54 = vld [vmem:[%s2739_s11] sm:$0xff]  }
 0x4a4   : > { %1761 = vmatprep.mubr.msk.bf16.mxu1 %vm2216_vm1, %v2215_v22  ;;  %1771 = vmatprep.subr.bf16.mxu1 %v2215_v22 }
 0x4a9   : > { %v1978_v56 = vpop.eup %1977 }
 0x4aa   : > { %1762 = vmatmul.mubr.msk.bf16.vlgmr.msra.gmra.mrb[16].mxu1 %vm810_vm3, %v931_v55  ;;  %v1146_v58 = vsel %vm810_vm3, %v1978_v56, 0.0  ;;  %v1149_v62 = vpack.c.bf16 %v1978_v56, %v1978_v56  ;;  %v1957_v55 = vld [vmem:[%s2741_s13] sm:$0xff]   ;;  %v1958_v56 = vld [vmem:[%s2741_s13 + $0x8] sm:$0xff]  }
 0x4ab   : > { %1772 = vmatpush3.bf16.msra.mxu1 %v1042_v57  ;;  %1147 = vadd.xlane.f32.xlu0 %v1146_v58  ;;  %v1959_v57 = vld [vmem:[%s2741_s13 + $0x10] sm:$0xff]  }
 0x4ac   : > { %1773 = vmatprep.mubr.msk.bf16.mxu1 %vm2216_vm1, %v2215_v22  ;;  %1783 = vmatprep.subr.bf16.mxu1 %v2215_v22 }
 0x4af   : > { %818 = vadd.xlane.f32.xlu0 %v817_v59 }
 0x4b2   : > { %1774 = vmatmul.mubr.msk.bf16.vlgmr.msra.gmra.mrb[20].mxu1 %vm810_vm3, %v1040_v60 }
 0x4b3   : > { %1784 = vmatpush3.bf16.msra.mxu1 %v1151_v61  ;;  %1785 = vmatprep.mubr.msk.bf16.mxu1 %vm2216_vm1, %v2215_v22 }
 0x4b4   : > { %1797 = vmatprep.subr.bf16.mxu1 %v2215_v22 }
 0x4ba   : > { %1786 = vmatmul.mubr.msk.bf16.vlgmr.msra.gmra.mrb[24].mxu1 %vm810_vm3, %v1149_v62  ;;  %v1667_v62 = vld [vmem:[#allocation8] ss:$0 sm:$0xff] }
 0x4bb   : > { %1801 = vmatprep.mubr.msk.bf16.mxu1 %vm2216_vm1, %v2215_v22  ;;  %1798 = vmatpush3.bf16.msra.mxu1 %v1955_v54 }
 0x4bc   : > { %1799 = vmatprep.subr.bf16.mxu1 %v2215_v22 }
 0x524   : > { %v930_v63 = vpop.xlane.xlu0 %929 }
 0x525   : > { %1979 = vrcp.f32 %v930_v63 }
 0x52f   : > { %v1980_v6 = vpop.eup %1979 }
 0x530   : > { %v1039_v4 = vpop.xlane.xlu1 %1038 }
 0x531   : > { %1981 = vrcp.f32 %v1039_v4 }
 0x538   : > { %v1148_v13 = vpop.xlane.xlu0 %1147 }
 0x539   : > { %1983 = vrcp.f32 %v1148_v13 }
 0x53b   : > { %v1982_v16 = vpop.eup %1981 }
 0x53c   : > { %v819_v31 = vpop.xlane.xlu0 %818 }
 0x53d   : > { %1985 = vrcp.f32 %v819_v31 }
 0x543   : > { %v1984_v24 = vpop.eup %1983 }
 0x547   : > { %v1986_v32 = vpop.eup %1985 }
 0x575   : > { %v862_v0 = vpop.f32.mrb[12].mxu1 }
 0x576   : > { %v1751_v2 = vpop.f32.mrb[13].mxu1  ;;  %v869_v33 = vmul.f32 %v1986_v32, %v862_v0  ;;  %v1668_v0 = vld [vmem:[%s2738_s10] ss:$0 sm:$0xff] }
 0x577   : > { %v865_v3 = vpop.f32.mrb[14].mxu1 }
 0x578   : > { %v1752_v5 = vpop.f32.mrb[15].mxu1  ;;  %v870_v36 = vpack.c.bf16 %v869_v33, %v869_v33 }
 0x579   : > { %v1960_v5 = vld [vmem:[%s2741_s13 + $0x18] sm:$0xff]  }
 0x57d   : > { %v972_v7 = vpop.f32.mrb[16].mxu1 }
 0x57e   : > { %v979_v9 = vmul.f32 %v1980_v6, %v972_v7  ;;  %v1763_v10 = vpop.f32.mrb[17].mxu1  ;;  %v1961_v6 = vld [vmem:[%s2741_s13 + $0x20] sm:$0xff]   ;;  %v1962_v7 = vld [vmem:[%s2741_s13 + $0x28] sm:$0xff]  }
 0x57f   : > { %v975_v11 = vpop.f32.mrb[18].mxu1  ;;  %v1669_v10 = vld [vmem:[%s2784_s26] ss:$0 sm:$0xff]  ;;  %s2227_s26 = smov [#allocation10]  }
 0x580   : > { %v980_v14 = vpack.c.bf16 %v979_v9, %v979_v9  ;;  %v1764_v15 = vpop.f32.mrb[19].mxu1  ;;  %v1964_v9 = vld [vmem:[%s2741_s13 + $0x38] sm:$0xff]   ;;  %s2107_s20 = sshll.u32 %s2227_s26, 4  ;;  %s2108_s20 = int_to_ptr.vmem [resolvable:$false] %s2107_s20 }
 0x581   : > { %p2110_p4 = scmp.lt.s32.totalorder %s2676_s18, %s2108_s20 }
 0x582   : > { %1200 = vrot.lane.b32.xlu0 %v980_v14, %s2224_s17  ;;  %s1509_s17 = sadd.s32 %s2193_s21, %s1683_s19  ;;  %s1498_s21 = scalar_lea.sflag [#allocation4], %s550_s25 }
 0x583   : > { %s1684_s14 = sshll.u32 %s1509_s17, 7  ;;  %s2109_s19 = scalar_lea.vmem %s2108_s20, 256 }
 0x584   : > { %s2674_s22 = scalar_lea.hbm %s2787_s16, %s1684_s14  ;;  %p2111_p5 = scmp.lt.s32.totalorder %s2109_s19, %s2103_s12 }
 0x585   : > { %v1081_v17 = vpop.f32.mrb[20].mxu1 }
 0x586   : > { %v1088_v18 = vmul.f32 %v1982_v16, %v1081_v17  ;;  %v1775_v19 = vpop.f32.mrb[21].mxu1  ;;  %p2112_p6 = por %p2111_p5, %p2110_p4 }
 0x587   : > { %v1084_v20 = vpop.f32.mrb[22].mxu1 }
 0x588   : > { %v1089_v21 = vpack.c.bf16 %v1088_v18, %v1088_v18  ;;  %v1776_v23 = vpop.f32.mrb[23].mxu1  ;;  %p2113_p7 = pnand %p2112_p6, %p2106_p1 }
 0x58a   : > { %1203 = vrot.lane.b32.xlu1 %v1089_v21, %s2225_s27  ;;  %v1673_v21 = vld [vmem:[%s2785_s28] ss:$0 sm:$0xff] }
 0x58d   : > { %v1190_v25 = vpop.f32.mrb[24].mxu1 }
 0x58e   : > { %v1197_v26 = vmul.f32 %v1984_v24, %v1190_v25  ;;  %v1787_v27 = vpop.f32.mrb[25].mxu1 }
 0x58f   : > { %v1193_v28 = vpop.f32.mrb[26].mxu1 }
 0x590   : > { %v1198_v29 = vpack.c.bf16 %v1197_v26, %v1197_v26  ;;  %v1788_v30 = vpop.f32.mrb[27].mxu1 }
 0x592   : > { %1206 = vrot.lane.b32.xlu1 %v1198_v29, %s2226_s15 }
 0x5f4   : > { %v1201_v34 = vpop.permute.xlu0 %1200 }
 0x5f5   : > { %v1210_v37 = vsel %vm763_vm2, %v870_v36, %v1201_v34 }
 0x5fc   : > { %v1204_v35 = vpop.permute.xlu1 %1203 }
 0x5fd   : > { %v1212_v38 = vsel %vm810_vm3, %v1210_v37, %v1204_v35 }
 0x604   : > { %v1207_v39 = vpop.permute.xlu1 %1206 }
 0x605   : > { %v1215_v40 = vsel %vm1213_vm4, %v1212_v38, %v1207_v39 }
 0x606   : > { %1794 = vmatmul.mubr.msk.bf16.vlgmr.msra.gmra.mrb[12].mxu0 %vm564_vm0, %v1215_v40 }
 0x607   : > { %1821 = vmatprep.mubr.msk.bf16.mxu0 %vm2216_vm1, %v2215_v22  ;;  %1806 = vmatpush3.bf16.msra.mxu0 %v1957_v55 }
 0x608   : > { %1807 = vmatprep.subr.bf16.mxu0 %v2215_v22 }
 0x60b   : > { %1808 = vmatpush3.bf16.msra.mxu0 %v1958_v56 }
 0x60c   : > { %1809 = vmatprep.subr.bf16.mxu0 %v2215_v22 }
 0x60f   : > { %1810 = vmatpush3.bf16.msra.mxu0 %v1959_v57 }
 0x610   : > { %1811 = vmatprep.subr.bf16.mxu0 %v2215_v22 }
 0x613   : > { %1812 = vmatpush3.bf16.msra.mxu0 %v1960_v5 }
 0x614   : > { %1813 = vmatprep.subr.bf16.mxu0 %v2215_v22 }
 0x617   : > { %1814 = vmatpush3.bf16.msra.mxu0 %v1961_v6 }
 0x618   : > { %1815 = vmatprep.subr.bf16.mxu0 %v2215_v22 }
 0x61b   : > { %1816 = vmatpush3.bf16.msra.mxu0 %v1962_v7 }
 0x61c   : > { %1817 = vmatprep.subr.bf16.mxu0 %v2215_v22 }
 0x61f   : > { %1818 = vmatpush3.bf16.msra.mxu0 %v1963_v8 }
 0x620   : > { %1819 = vmatprep.subr.bf16.mxu0 %v2215_v22 }
 0x623   : > { %1820 = vmatpush3.bf16.msra.mxu0 %v1964_v9 }
 0x6d9   : > { %v1275_v42 = vpop.f32.mrb[12].mxu0 }
 0x6da   : > { %v1276_v43 = vadd.f32 %v1663_v41, %v1275_v42  ;;  %v1795_v44 = vpop.f32.mrb[13].mxu0 }
 0x6db   : > { %v1278_v45 = vpop.f32.mrb[14].mxu0 }
 0x6dc   : > { %v2613_v46 = vadd.f32 %v1276_v43, %v2501_v1  ;;  %v1796_v47 = vpop.f32.mrb[15].mxu0  ;;  %v1956_v1 = vld [vmem:[%s2739_s11 + $0x8] sm:$0xff]  }
 0x6dd   : > { %1800 = vmatpush3.bf16.msra.mxu1 %v1956_v1 }
 0x6de   : > { %v1284_v48 = vsel %vm564_vm0, %v2613_v46, 0.0 }
 0x6df   : > { %1285 = vadd.xlane.f32.xlu1 %v1284_v48 }
 0x76c   : > { %v1286_v49 = vpop.xlane.xlu1 %1285 }
 0x76d   : > { %v1287_v50 = vmul.f32 0.03125, %v1286_v49 }
 0x76f   : > { %v1288_v51 = vsub.f32 %v2613_v46, %v1287_v50 }
 0x771   : > { %v1289_v52 = vmul.f32 %v1288_v51, %v1288_v51 }
 0x773   : > { %v1290_v53 = vsel %vm564_vm0, %v1289_v52, 0.0 }
 0x774   : > { %1291 = vadd.xlane.f32.xlu0 %v1290_v53 }
 0x801   : > { %v1292_v58 = vpop.xlane.xlu0 %1291 }
 0x802   : > { %v1293_v59 = vmul.f32 0.03125, %v1292_v58 }
 0x804   : > { %v1294_v60 = vadd.f32 1e-05, %v1293_v59 }
 0x806   : > { %1987 = vrsqrt.f32 %v1294_v60 }
 0x810   : > { %v1988_v61 = vpop.eup %1987 }
 0x811   : > { %v1296_v63 = vmul.f32 %v1988_v61, %v1288_v51 }
 0x813   : > { %v1303_v2 = vmul.f32 %v1667_v62, %v1296_v63 }
 0x815   : > { %v1310_v3 = vadd.f32 %v1668_v0, %v1303_v2 }
 0x817   : > { %v1311_v4 = vpack.c.bf16 %v1310_v3, %v1310_v3 }
 0x819   : > { %1802 = vmatmul.mubr.msk.bf16.vlgmr.msra.gmra.mrb[28].mxu1 %vm564_vm0, %v1311_v4 }
 0x8ec   : > { %v1372_v11 = vpop.f32.mrb[28].mxu1 }
 0x8ed   : > { %v1373_v12 = vadd.f32 %v1669_v10, %v1372_v11  ;;  %v1803_v13 = vpop.f32.mrb[29].mxu1 }
 0x8ee   : > { %v1375_v14 = vpop.f32.mrb[30].mxu1 }
 0x8ef   : > { %v1379_v15 = vmul.f32 0.70710677, %v1373_v12  ;;  %v1804_v16 = vpop.f32.mrb[31].mxu1  ;;  %v1378_v17 = vmul.f32 0.5, %v1373_v12 }
 0x8f1   : > { %1989 = verf.f32 %v1379_v15 }
 0x8fb   : > { %v1990_v22 = vpop.eup %1989 }
 0x8fc   : > { %v1381_v18 = vadd.f32 1.0, %v1990_v22 }
 0x8fe   : > { %v1382_v19 = vmul.f32 %v1381_v18, %v1378_v17 }
 0x900   : > { %v1383_v20 = vpack.c.bf16 %v1382_v19, %v1382_v19 }
 0x902   : > { %1822 = vmatmul.mubr.bf16.vlgmr.msra.gmra.mrb[16].mxu0 %v1383_v20 }
 0x9d5   : > { %v1489_v23 = vpop.f32.mrb[16].mxu0 }
 0x9d6   : > { %v1490_v24 = vadd.f32 %v1673_v21, %v1489_v23  ;;  %v1823_v25 = vpop.f32.mrb[17].mxu0 }
 0x9d7   : > { %v1492_v26 = vpop.f32.mrb[18].mxu0 }
 0x9d8   : > { %v1495_v27 = vadd.f32 %v1490_v24, %v2613_v46  ;;  %v1824_v28 = vpop.f32.mrb[19].mxu0 }
 0x9da   : > { %1496 = vst.msk [vmem:[%s552_s29] sm:$0xff] %vm564_vm0, %v1495_v27 }
 0x9db   : > { %2116 = shalt.err (!%p2113_p7)
}
 0x9dc   : > { %s2117_s25 = scalar_lea.hbm %s2674_s22, 128  ;;  %s2121_s15 = scalar_lea.hbm %s2787_s16, 512 }
 0x9dd   : > { %p2118_p9 = scmp.ne.s32.totalorder %s2674_s22, %s2117_s25  ;;  %p2122_p3 = scmp.lt.u32.totalorder %s2674_s22, %s2787_s16 }
 0x9de   : > { %p2123_p8 = scmp.lt.u32.totalorder %s2121_s15, %s2117_s25  ;;  %p2125_p2 = scmp.lt.u32.totalorder %s2117_s25, %s2674_s22 }
 0x9df   : > { %p2119_p11 = pnand %p2118_p9, %p2788_p10 }
 0x9e0   : > { %p2124_p0 = por %p2123_p8, %p2122_p3 }
 0x9e1   : > { %p2120_p13 = pneg %p2119_p11 }
 0x9e2   : > { %p2126_p12 = por %p2125_p2, %p2124_p0 }
 0x9e4   : > { %p2127_p1 = pnand %p2126_p12, %p2120_p13 }
 0x9e6   : > { %2130 = shalt.err (!%p2127_p1)
}
 0x9e7   : > { %1841 = dma.vmem_to_hbm [thread:$0]  (%p2788_p10), %s2676_s18, 128, %s2674_s22, %s1498_s21  }
 0x9e8 PF: > { %s2789_s29 = sld [smem:[#allocation20_spill]]  ;;  %s2790_s24 = sld [smem:[#allocation15_spill]] }
 0x9e9   : > { %s2791_s23 = sld [smem:[#allocation24_spill]] }
 0x9ee   : > { %p1868_p4 = scmp.ge.s32.totalorder %s2789_s29, 2  ;;  %s1525_s12 = sand.u32 1, %s2790_s24  }
 0x9ef   : > { %p2792_p5 = scmp.ne.s32.totalorder %s2791_s23, 0  ;;  %s1526_s26 = scalar_lea.sflag [#allocation4], %s1525_s12 }
 0x9f1   : > { %p1857_p6 = pnand %p1868_p4, %p2792_p5 }
 0x9f3   : > { %2176 = dma.done.wait (!%p1857_p6), %s1526_s26, 128  }
 0x9f4   : > { %2178 = vsyncadd (!%p1857_p6), %s1526_s26, 4294967168  ;;  %s31_s25 = sadd.s32 1, %s2789_s29   ;;  %s2793_s18 = sld [smem:[#allocation16_spill]] }
 0x9f5   : > { %p28_p7 = scmp.ge.s32.totalorder %s31_s25, 6   ;;  %s2794_s19 = sld [smem:[#allocation17_spill]] }
 0x9f6   : > { %s2795_s20 = sld [smem:[#allocation25_spill]]  ;;  %s2796_s21 = sld [smem:[#allocation18_spill]] }
 0x9f7   : > { %s2797_s22 = sld [smem:[#allocation19_spill]]  ;;  %s2798_s23 = sld [smem:[#allocation21_spill]] }
 0x9f8   : > { %s2799_s24 = sld [smem:[#allocation23_spill]]  ;;  %30 = sbr.rel (!%p28_p7) target bundleno = 12 (0xc), region = 133 }
 0x9ff   :  { %1531 = vsyncpa [#allocation3], 1 }
 0xa00   :  { %1533 = vsyncpa [#allocation3 + $0x1], 1 }
 0xa01   :  { %1534 = vsyncpa [#allocation6], 1 }
 0xa02   :  { %1535 = vsyncpa [#allocation9], 1 }
 0xa03   :  { %1536 = vsyncpa [#allocation4], 1 }
 0xa04   :  { %1538 = vsyncpa [#allocation4 + $0x1], 1 }

// kernel: tpu_custom_call.1
= control target key start
LH: loop header
LB: loop body
LE: loop exit
PB: predicated region body
PF: predicated region fallthrough
CT: control target
= control target key end

     0   :  { %s2728_s0 = inlined_call_operand.vmem [shape: f32[2,16,32], index: 0, kind: input, shape index: {}]   ;;  %s2729_s1 = inlined_call_operand.vmem [shape: f32[1,32], index: 1, kind: input, shape index: {}]   ;;  %s2730_s2 = inlined_call_operand.vmem [shape: f32[1,32], index: 2, kind: input, shape index: {}]   ;;  %s2731_s3 = inlined_call_operand.vmem [shape: bf16[32,32], index: 3, kind: input, shape index: {}]   ;;  %s2732_s4 = inlined_call_operand.hbm [shape: f32[1,32], index: 4, kind: input, shape index: {}]   ;;  %s2733_s5 = inlined_call_operand.vmem [shape: bf16[32,64], index: 5, kind: input, shape index: {}]   ;;  %s2734_s6 = inlined_call_operand.hbm [shape: f32[1,64], index: 6, kind: input, shape index: {}]   ;;  %s2735_s7 = inlined_call_operand.vmem [shape: bf16[32,32], index: 7, kind: input, shape index: {}]   ;;  %s2736_s8 = inlined_call_operand.hbm [shape: f32[1,32], index: 8, kind: input, shape index: {}]   ;;  %s2737_s9 = inlined_call_operand.hbm [shape: f32[1,32], index: 9, kind: input, shape index: {}]   ;;  %s2738_s10 = inlined_call_operand.vmem [shape: f32[1,32], index: 10, kind: input, shape index: {}]   ;;  %s2739_s11 = inlined_call_operand.vmem [shape: bf16[32,128], index: 11, kind: input, shape index: {}]   ;;  %s2740_s12 = inlined_call_operand.vmem [shape: f32[1,128], index: 12, kind: input, shape index: {}]   ;;  %s2741_s13 = inlined_call_operand.vmem [shape: bf16[128,32], index: 13, kind: input, shape index: {}]   ;;  %s2742_s14 = inlined_call_operand.vmem [shape: f32[1,32], index: 14, kind: input, shape index: {}]   ;;  %s2743_s15 = inlined_call_operand.hbm [shape: f32[2,16,32], index: 15, kind: output, shape index: {}]  }
   0x1   :  { %2761 = sst [smem:[#allocation26_spill]] %s2740_s12 }
   0x2   :  { %2762 = sst [smem:[#allocation27_spill]] %s2742_s14 }
   0x3   :  { %2763 = sst [smem:[#allocation28_spill]] %s2743_s15 }
   0x4   :  { %20 = vsyncpa [#allocation3], 0 }
   0x5   :  { %21 = vsyncpa [#allocation6], 0 }
   0x6   :  { %22 = vsyncpa [#allocation9], 0 }
   0x7   :  { %23 = vsyncpa [#allocation4], 0 }
   0x8   :  { %25 = vsyncpa [#allocation4 + $0x1], 0  ;;  %s2308_s18 = smov 0   ;;  %s2310_s19 = smov 0  }
   0x9   :  { %s2312_s20 = smov 0   ;;  %s2314_s21 = smov 0  }
   0xa   :  { %s2316_s22 = smov 0   ;;  %s2318_s23 = smov 0  }
   0xb   :  { %s2320_s24 = smov 0   ;;  %s2322_s25 = smov 0  }
   0xc LB: > { %2764 = sst [smem:[#allocation15_spill]] %s2181_s18  ;;  %s1628_s26 = sadd.s32 4294967295, %s2209_s25   ;;  %s2209_s25 = sphi %s2322_s25, %s31_s25   ;;  %s2205_s24 = sphi %s2320_s24, %s2799_s24   ;;  %s2201_s23 = sphi %s2318_s23, %s2798_s23   ;;  %s2197_s22 = sphi %s2316_s22, %s2797_s22   ;;  %s2193_s21 = sphi %s2314_s21, %s2796_s21   ;;  %s2189_s20 = sphi %s2312_s20, %s2795_s20   ;;  %s2185_s19 = sphi %s2310_s19, %s2794_s19   ;;  %s2181_s18 = sphi %s2308_s18, %s2793_s18  }
   0xd   : > { %2765 = sst [smem:[#allocation16_spill]] %s2185_s19  ;;  %s1629_s27 = sadd.s32 4294967294, %s2209_s25  }
   0xe   : > { %2766 = sst [smem:[#allocation17_spill]] %s2189_s20  ;;  %s40_s28 = sadd.s32 1, %s2201_s23 }
   0xf   : > { %2767 = sst [smem:[#allocation18_spill]] %s2201_s23  ;;  %s43_s29 = sadd.s32 1, %s2205_s24 }
  0x10   : > { %2768 = sst [smem:[#allocation19_spill]] %s2205_s24  ;;  %p41_p0 = scmp.ge.s32.totalorder %s40_s28, 2 }
  0x11   : > { %2769 = sst [smem:[#allocation20_spill]] %s2209_s25  ;;  %s372_s30 = sadd.s32 1, %s2189_s20 }
  0x12   : > { %p382_p1 = scmp.ne.s32.totalorder %s2189_s20, %s2185_s19  ;;  %p383_p2 = scmp.eq.s32.totalorder %s1628_s26, 3 }
  0x13   : > { %s2801_s28 = smov (%p41_p0, %s40_s28), 0  ;;  %s2803_s29 = smov (!%p41_p0, %s43_s29), %s2205_s24 }
  0x14   : > { %2770 = sst [smem:[#allocation21_spill]] %s2801_s28  ;;  %s368_s16 = ssub.s32 %s2201_s23, %s2801_s28 }
  0x15   : > { %p2360_p3 = por %p383_p2, %p382_p1  ;;  %p45_p4 = scmp.ge.s32.totalorder %s2803_s29, 2 }
  0x16   : > { %p388_p5 = scmp.ne.s32.totalorder %s2185_s19, %s2181_s18  ;;  %p389_p6 = scmp.eq.s32.totalorder %s1629_s27, 3 }
  0x17   : > { %s2771_s17 = scalar_select %p2360_p3, 1, 0 }
  0x18   : > { %p1630_p7 = scmp.ge.s32.totalorder %s2209_s25, 1  ;;  %s2805_s29 = smov (%p45_p4, %s2803_s29), 0 }
  0x19   : > { %2772 = sst [smem:[#allocation22_spill]] %s2771_s17  ;;  %p2369_p8 = por %p389_p6, %p388_p5 }
  0x1a   : > { %2773 = sst [smem:[#allocation23_spill]] %s2805_s29  ;;  %p396_p9 = scmp.lt.s32.totalorder %s2209_s25, 5 }
  0x1b   : > { %s2774_s15 = scalar_select %p2369_p8, 1, 0 }
  0x1c   : > { %s367_s14 = ssub.s32 %s2205_s24, %s2805_s29  ;;  %p2376_p10 = pnand %p1630_p7, %p396_p9 }
  0x1d   : > { %2775 = sst [smem:[#allocation24_spill]] %s2774_s15  ;;  %s369_s12 = sor.u32 %s368_s16, %s367_s14 }
  0x1e   : > { %s2776_s28 = scalar_select %p2376_p10, 1, 0 }
  0x1f   : > { %p370_p11 = scmp.eq.s32.totalorder %s369_s12, 0  ;;  %p2380_p12 = scmp.eq.s32.totalorder %s1628_s26, 0 }
  0x20   : > { %p1843_p13 = pneg %p2376_p10  ;;  %s2211_s14 = smov [#allocation5]  }
  0x21   : > { %s2777_s23 = scalar_select %p2380_p12, 1, 0 }
  0x22   : > { %s2387_s27 = scalar_select %p370_p11, %s2189_s20, %s372_s30  }
  0x23   : > { %p2391_p0 = pnand %p2380_p12, %p1843_p13  ;;  %s432_s16 = sshll.u32 %s2211_s14, 4  ;;  %s433_s16 = int_to_ptr.vmem [resolvable:$true] %s432_s16 }
  0x24   : > { %2778 = sst [smem:[#allocation25_spill]] %s2387_s27  ;;  %s1991_s26 = scalar_lea.hbm %s2734_s6, 16 }
  0x25   : > { %p1992_p1 = scmp.ne.s32.totalorder %s2734_s6, %s1991_s26  ;;  %p2403_p2 = pneg %p2391_p0 }
  0x26   : > { %p1998_p6 = scmp.lt.u32.totalorder %s1991_s26, %s2734_s6 }
  0x27   : > { %p1994_p4 = pnand %p2403_p2, %p1992_p1 }
  0x29   : > { %p1995_p5 = pneg %p1994_p4 }
  0x2b   : > { %p2000_p7 = pnand %p1998_p6, %p1995_p5 }
  0x2d   : > { %2003 = shalt.err (!%p2000_p7)
}
  0x2e   : > { %s2004_s29 = scalar_lea.vmem %s433_s16, 16  ;;  %s2011_s18 = scalar_lea.vmem %s433_s16, 32 }
  0x2f   : > { %p2005_p9 = scmp.ne.s32.totalorder %s433_s16, %s2004_s29  ;;  %p2012_p8 = scmp.lt.s32.totalorder %s433_s16, %s433_s16 }
  0x30   : > { %p2013_p3 = scmp.lt.s32.totalorder %s2011_s18, %s2004_s29 }
  0x31   : > { %p2007_p11 = pnand %p2005_p9, %p2403_p2 }
  0x32   : > { %p2014_p12 = por %p2013_p3, %p2012_p8 }
  0x33   : > { %p2008_p13 = pneg %p2007_p11 }
  0x35   : > { %p2015_p10 = pnand %p2014_p12, %p2008_p13 }
  0x37   : > { %2018 = shalt.err (!%p2015_p10)
}
  0x38   : > { %1849 = dma.hbm_to_vmem [thread:$0]  (!%p2391_p0), %s2734_s6, 16, %s433_s16, [#allocation6]  }
  0x39   : > { %s2212_s27 = smov [#allocation2]   ;;  %s2213_s14 = smov [#allocation7]  }
  0x3a   : > { %s418_s26 = sshll.u32 %s2212_s27, 4  ;;  %s446_s20 = sshll.u32 %s2213_s14, 4  ;;  %s419_s26 = int_to_ptr.vmem [resolvable:$true] %s418_s26  ;;  %s2419_s20 = int_to_ptr.vmem [resolvable:$true] %s446_s20 }
  0x3b   : > { %s2019_s29 = scalar_lea.hbm %s2732_s4, 16 }
  0x3c   : > { %p2020_p3 = scmp.ne.s32.totalorder %s2732_s4, %s2019_s29  ;;  %p2026_p12 = scmp.lt.u32.totalorder %s2019_s29, %s2732_s4 }
  0x3e   : > { %p2022_p8 = pnand %p2020_p3, %p2403_p2 }
  0x40   : > { %p2023_p10 = pneg %p2022_p8 }
  0x42   : > { %p2028_p1 = pnand %p2026_p12, %p2023_p10 }
  0x44   : > { %2031 = shalt.err (!%p2028_p1)
}
  0x45   : > { %s2032_s12 = scalar_lea.vmem %s419_s26, 16  ;;  %s2039_s25 = scalar_lea.vmem %s419_s26, 32 }
  0x46   : > { %p2033_p4 = scmp.ne.s32.totalorder %s419_s26, %s2032_s12  ;;  %p2040_p7 = scmp.lt.s32.totalorder %s419_s26, %s419_s26 }
  0x47   : > { %p2041_p9 = scmp.lt.s32.totalorder %s2039_s25, %s2032_s12 }
  0x48   : > { %p2035_p5 = pnand %p2033_p4, %p2403_p2 }
  0x49   : > { %p2042_p11 = por %p2041_p9, %p2040_p7 }
  0x4a   : > { %p2036_p6 = pneg %p2035_p5 }
  0x4c   : > { %p2043_p13 = pnand %p2042_p11, %p2036_p6 }
  0x4e   : > { %2046 = shalt.err (!%p2043_p13)
}
  0x4f   : > { %1846 = dma.hbm_to_vmem [thread:$0]  (!%p2391_p0), %s2732_s4, 16, %s419_s26, [#allocation3]  }
  0x50   : > { %s2047_s29 = scalar_lea.hbm %s2736_s8, 16 }
  0x51   : > { %p2048_p3 = scmp.ne.s32.totalorder %s2736_s8, %s2047_s29  ;;  %p2054_p12 = scmp.lt.u32.totalorder %s2047_s29, %s2736_s8 }
  0x53   : > { %p2050_p8 = pnand %p2048_p3, %p2403_p2 }
  0x55   : > { %p2051_p10 = pneg %p2050_p8 }
  0x57   : > { %p2056_p1 = pnand %p2054_p12, %p2051_p10 }
  0x59   : > { %2059 = shalt.err (!%p2056_p1)
}
  0x5a   : > { %s2060_s26 = scalar_lea.vmem %s2419_s20, 16  ;;  %s2067_s25 = scalar_lea.vmem %s2419_s20, 32 }
  0x5b   : > { %p2061_p4 = scmp.ne.s32.totalorder %s2419_s20, %s2060_s26  ;;  %p2068_p7 = scmp.lt.s32.totalorder %s2419_s20, %s2419_s20 }
  0x5c   : > { %p2069_p9 = scmp.lt.s32.totalorder %s2067_s25, %s2060_s26 }
  0x5d   : > { %p2063_p5 = pnand %p2061_p4, %p2403_p2 }
  0x5e   : > { %p2070_p11 = por %p2069_p9, %p2068_p7 }
  0x5f   : > { %p2064_p6 = pneg %p2063_p5 }
  0x61   : > { %p2071_p13 = pnand %p2070_p11, %p2064_p6 }
  0x63   : > { %2074 = shalt.err (!%p2071_p13)
}
  0x64   : > { %1852 = dma.hbm_to_vmem [thread:$0]  (!%p2391_p0), %s2736_s8, 16, %s2419_s20, [#allocation6]  }
  0x65   : > { %s2214_s27 = smov [#allocation8]   ;;  %s2075_s24 = scalar_lea.hbm %s2737_s9, 16 }
  0x66   : > { %s457_s14 = sshll.u32 %s2214_s27, 4  ;;  %p2076_p3 = scmp.ne.s32.totalorder %s2737_s9, %s2075_s24  ;;  %s458_s14 = int_to_ptr.vmem [resolvable:$true] %s457_s14 }
  0x67   : > { %p2082_p12 = scmp.lt.u32.totalorder %s2075_s24, %s2737_s9 }
  0x68   : > { %p2078_p8 = pnand %p2076_p3, %p2403_p2 }
  0x6a   : > { %p2079_p10 = pneg %p2078_p8 }
  0x6c   : > { %p2084_p1 = pnand %p2082_p12, %p2079_p10 }
  0x6e   : > { %2087 = shalt.err (!%p2084_p1)
}
  0x6f   : > { %s2088_s20 = scalar_lea.vmem %s458_s14, 16  ;;  %s2095_s19 = scalar_lea.vmem %s458_s14, 32 }
  0x70   : > { %p2089_p4 = scmp.ne.s32.totalorder %s458_s14, %s2088_s20  ;;  %p2096_p7 = scmp.lt.s32.totalorder %s458_s14, %s458_s14 }
  0x71   : > { %p2097_p9 = scmp.lt.s32.totalorder %s2095_s19, %s2088_s20 }
  0x72   : > { %p2091_p5 = pnand %p2089_p4, %p2403_p2 }
  0x73   : > { %p2098_p11 = por %p2097_p9, %p2096_p7 }
  0x74   : > { %p2092_p6 = pneg %p2091_p5 }
  0x76   : > { %p2099_p13 = pnand %p2098_p11, %p2092_p6 }
  0x78   : > { %2102 = shalt.err (!%p2099_p13)
}
  0x79   : > { %1855 = dma.hbm_to_vmem [thread:$0]  (!%p2391_p0), %s2737_s9, 16, %s458_s14, [#allocation9]  }
  0x7a   : > { %p2781_p3 = scmp.ne.s32.totalorder %s2776_s28, 0 }
  0x7b   : > { %p2782_p8 = scmp.ne.s32.totalorder (!%p2781_p3), %s2777_s23, 0 }
  0x7c   : > { %493 = sbr.rel (%p2781_p3) target bundleno = 2536 (0x9e8), region = 80 }
  0x83   : > { %2164 = dma.done.wait (%p2782_p8), [#allocation3], 16  }
  0x84   : > { %2166 = vsyncadd (%p2782_p8), [#allocation3], 4294967280 }
  0x85   : > { %2168 = dma.done.wait (%p2782_p8), [#allocation6], 32  }
  0x86   : > { %2170 = vsyncadd (%p2782_p8), [#allocation6], 4294967264 }
  0x87   : > { %2172 = dma.done.wait (%p2782_p8), [#allocation9], 16  }
  0x88   : > { %2174 = vsyncadd (%p2782_p8), [#allocation9], 4294967280  ;;  %p553_p0 = scmp.lt.s32.totalorder %s2197_s22, 1  ;;  %s1644_s28 = sshll.u32 %s2193_s21, 3  ;;  %vm564_vm0 = vcmask 261120   ;;  %v1949_v21 = vld [vmem:[%s2733_s5] sm:$0xff]  }
  0x89   : > { %v2215_v22 = vmov 0.0   ;;  %v1950_v23 = vld [vmem:[%s2733_s5 + $0x8] sm:$0xff]   ;;  %vm2216_vm1 = vmmov 0   ;;  %v1645_v35 = vld [vmem:[%s2729_s1] ss:$0 sm:$0xff]  ;;  %vm763_vm2 = vcmask 64512  }
  0x8a   : > { %s554_s15 = scalar_select %p553_p0, %s2197_s22, 1  ;;  %1725 = vmatprep.subr.bf16.mxu1 %v2215_v22  ;;  %1753 = vmatprep.subr.bf16.mxu0 %v2215_v22  ;;  %v1646_v40 = vld [vmem:[%s2730_s2] ss:$0 sm:$0xff]  ;;  %v1952_v48 = vld [vmem:[%s2731_s3 + $0x8] sm:$0xff]   ;;  %v1647_v51 = vld [vmem:[#allocation5] ss:$0 sm:$0xff] }
  0x8b   : > { %1726 = vmatpush3.bf16.msra.mxu1 %v1949_v21  ;;  %1729 = vmatprep.mubr.msk.bf16.mxu1 %vm2216_vm1, %v2215_v22  ;;  %v1951_v45 = vld [vmem:[%s2731_s3] sm:$0xff]   ;;  %s2217_s14 = smov 120   ;;  %s2218_s29 = smov 104   ;;  %vm810_vm3 = vcmask 130048   ;;  %vm1213_vm4 = vcmask 195584  }
  0x8c   : > { %s1687_s30 = sshll.u32 %s554_s15, 4  ;;  %1727 = vmatprep.subr.bf16.mxu1 %v2215_v22  ;;  %1755 = vmatprep.mubr.msk.bf16.mxu0 %vm2216_vm1, %v2215_v22  ;;  %v1651_v59 = vld [vmem:[#allocation2] ss:$0 sm:$0xff]  ;;  %s2221_s23 = smov 80  }
  0x8d   : > { %s557_s18 = scalar_lea.vmem %s2728_s0, %s1687_s30  ;;  %s2222_s16 = smov 72  }
  0x8e   : > { %s677_s24 = scalar_lea.vmem %s557_s18, %s1644_s28  ;;  %v562_v0 = vld [vmem:[%s557_s18] sm:$0xff]  ;;  %v563_v2 = vld [vmem:[%s557_s18 + $0x8] sm:$0xff]  ;;  %s2219_s18 = smov 112  }
  0x8f   : > { %v2501_v1 = vld [vmem:[%s677_s24] sm:$0xff]  ;;  %v565_v3 = vsel %vm564_vm0, %v562_v0, 0.0  ;;  %v568_v5 = vsel %vm564_vm0, %v563_v2, 0.0  ;;  %1728 = vmatpush3.bf16.msra.mxu1 %v1950_v23  ;;  %s2220_s24 = smov 88   ;;  %s2223_s12 = smov 96  }
  0x90   : > { %v679_v4 = vsel %vm564_vm0, %v2501_v1, 0.0  ;;  %566 = vadd.xlane.f32.xlu0 %v565_v3  ;;  %1733 = vmatprep.subr.bf16.mxu1 %v2215_v22  ;;  %s2224_s17 = smov 8   ;;  %s2225_s27 = smov 16  }
  0x91   : > { %680 = vadd.xlane.f32.xlu1 %v679_v4  ;;  %s2226_s15 = smov 24   ;;  %s2784_s26 = sld [smem:[#allocation26_spill]] }
  0x92   : > { %s1683_s19 = sshll.u32 %s2197_s22, 1  ;;  %s2785_s28 = sld [smem:[#allocation27_spill]] }
  0x93   : > { %s2786_s30 = sld [smem:[#allocation22_spill]] }
  0x94   : > { %569 = vadd.xlane.f32.xlu0 %v568_v5 }
  0x99   : > { %p2788_p10 = scmp.ne.s32.totalorder %s2786_s30, 0 }
 0x11d   : > { %v567_v6 = vpop.xlane.xlu0 %566 }
 0x11e   : > { %v681_v7 = vpop.xlane.xlu1 %680  ;;  %v572_v8 = vmul.f32 0.03125, %v567_v6 }
 0x11f   : > { %v682_v9 = vmul.f32 0.03125, %v681_v7 }
 0x120   : > { %v574_v10 = vsub.f32 %v562_v0, %v572_v8 }
 0x121   : > { %v683_v11 = vsub.f32 %v2501_v1, %v682_v9  ;;  %v570_v12 = vpop.xlane.xlu0 %569 }
 0x122   : > { %v573_v13 = vmul.f32 0.03125, %v570_v12  ;;  %v576_v14 = vmul.f32 %v574_v10, %v574_v10 }
 0x123   : > { %v684_v15 = vmul.f32 %v683_v11, %v683_v11 }
 0x124   : > { %v575_v16 = vsub.f32 %v563_v2, %v573_v13  ;;  %v578_v17 = vsel %vm564_vm0, %v576_v14, 0.0 }
 0x125   : > { %579 = vadd.xlane.f32.xlu1 %v578_v17  ;;  %v685_v18 = vsel %vm564_vm0, %v684_v15, 0.0 }
 0x126   : > { %v577_v19 = vmul.f32 %v575_v16, %v575_v16 }
 0x128   : > { %v581_v20 = vsel %vm564_vm0, %v577_v19, 0.0 }
 0x129   : > { %686 = vadd.xlane.f32.xlu1 %v685_v18  ;;  %582 = vadd.xlane.f32.xlu0 %v581_v20 }
 0x1b2   : > { %v580_v24 = vpop.xlane.xlu1 %579 }
 0x1b3   : > { %v584_v25 = vmul.f32 0.03125, %v580_v24 }
 0x1b5   : > { %v586_v26 = vadd.f32 1e-05, %v584_v25 }
 0x1b6   : > { %v687_v27 = vpop.xlane.xlu1 %686  ;;  %v583_v28 = vpop.xlane.xlu0 %582 }
 0x1b7   : > { %1965 = vrsqrt.f32 %v586_v26  ;;  %v688_v29 = vmul.f32 0.03125, %v687_v27  ;;  %v585_v30 = vmul.f32 0.03125, %v583_v28 }
 0x1b9   : > { %v689_v31 = vadd.f32 1e-05, %v688_v29  ;;  %v587_v32 = vadd.f32 1e-05, %v585_v30 }
 0x1bb   : > { %1967 = vrsqrt.f32 %v689_v31 }
 0x1bc   : > { %1969 = vrsqrt.f32 %v587_v32 }
 0x1c1   : > { %v1966_v33 = vpop.eup %1965 }
 0x1c2   : > { %v590_v34 = vmul.f32 %v1966_v33, %v574_v10 }
 0x1c4   : > { %v598_v39 = vmul.f32 %v1645_v35, %v590_v34 }
 0x1c5   : > { %v1968_v36 = vpop.eup %1967 }
 0x1c6   : > { %v1970_v37 = vpop.eup %1969  ;;  %v691_v41 = vmul.f32 %v1968_v36, %v683_v11  ;;  %v606_v43 = vadd.f32 %v1646_v40, %v598_v39 }
 0x1c7   : > { %v591_v38 = vmul.f32 %v1970_v37, %v575_v16 }
 0x1c8   : > { %v692_v47 = vmul.f32 %v1645_v35, %v691_v41 }
 0x1c9   : > { %v599_v42 = vmul.f32 %v1645_v35, %v591_v38 }
 0x1ca   : > { %v693_v49 = vadd.f32 %v1646_v40, %v692_v47 }
 0x1cb   : > { %v607_v44 = vadd.f32 %v1646_v40, %v599_v42 }
 0x1cc   : > { %v694_v50 = vpack.c.bf16 %v693_v49, %v693_v49 }
 0x1cd   : > { %v608_v46 = vpack.c.bf16 %v607_v44, %v606_v43 }
 0x1cf   : > { %1730 = vmatmul.mubr.msk.bf16.vlgmr.msra.gmra.mrb[0].mxu1 %vm564_vm0, %v608_v46 }
 0x1d0   : > { %1734 = vmatpush3.bf16.msra.mxu1 %v1951_v45  ;;  %1737 = vmatprep.mubr.msk.bf16.mxu1 %vm2216_vm1, %v2215_v22 }
 0x1d1   : > { %1735 = vmatprep.subr.bf16.mxu1 %v2215_v22 }
 0x1d4   : > { %1736 = vmatpush3.bf16.msra.mxu1 %v1952_v48 }
 0x1d5   : > { %1741 = vmatprep.subr.bf16.mxu1 %v2215_v22 }
 0x1d7   : > { %1738 = vmatmul.mubr.msk.bf16.vlgmr.msra.gmra.mrb[4].mxu1 %vm564_vm0, %v694_v50 }
 0x1d8   : > { %1743 = vmatprep.mubr.msk.bf16.mxu1 %vm2216_vm1, %v2215_v22 }
 0x2a2   : > { %v669_v52 = vpop.f32.mrb[0].mxu1 }
 0x2a3   : > { %v1731_v53 = vpop.f32.mrb[1].mxu1  ;;  %v670_v55 = vadd.f32 %v1647_v51, %v669_v52 }
 0x2a4   : > { %v672_v54 = vpop.f32.mrb[2].mxu1 }
 0x2a5   : > { %v673_v56 = vadd.f32 %v1647_v51, %v672_v54  ;;  %v1732_v57 = vpop.f32.mrb[3].mxu1 }
 0x2a7   : > { %v2545_v58 = vpack.c.bf16 %v673_v56, %v670_v55 }
 0x2a9   : > { %874 = vrot.lane.b32.xlu0 %v2545_v58, %s2217_s14  ;;  %v768_v60 = vsel %vm763_vm2, %v2545_v58, 0 }
 0x2aa   : > { %v755_v61 = vpop.f32.mrb[4].mxu1  ;;  %1742 = vmatpush3.bf16.xpose.msra.mxu1 %v768_v60 }
 0x2ab   : > { %v756_v62 = vadd.f32 %v1651_v59, %v755_v61  ;;  %v1739_v63 = vpop.f32.mrb[5].mxu1  ;;  %1747 = vmatprep.subr.bf16.mxu1 %v2215_v22 }
 0x2ac   : > { %v758_v0 = vpop.f32.mrb[6].mxu1 }
 0x2ad   : > { %v761_v2 = vmul.f32 0.35355338, %v756_v62  ;;  %1092 = vrot.lane.b32.xlu0 %v2545_v58, %s2218_s29  ;;  %v1740_v3 = vpop.f32.mrb[7].mxu1 }
 0x2af   : > { %v762_v4 = vpack.c.bf16 %v761_v2, %v761_v2 }
 0x2b1   : > { %872 = vrot.lane.b32.xlu1 %v762_v4, %s2217_s14  ;;  %1744 = vmatmul.mubr.msk.bf16.vlgmr.msra.gmra.mrb[8].mxu1 %vm763_vm2, %v762_v4 }
 0x2b2   : > { %1749 = vmatprep.mubr.msk.bf16.mxu1 %vm2216_vm1, %v2215_v22 }
 0x2b5   : > { %983 = vrot.lane.b32.xlu1 %v2545_v58, %s2219_s18 }
 0x2b9   : > { %981 = vrot.lane.b32.xlu1 %v762_v4, %s2219_s18 }
 0x2bd   : > { %1090 = vrot.lane.b32.xlu1 %v762_v4, %s2218_s29 }
 0x31b   : > { %v875_v5 = vpop.permute.xlu0 %874 }
 0x31c   : > { %v880_v6 = vsel %vm763_vm2, %v875_v5, 0 }
 0x31d   : > { %1754 = vmatpush3.bf16.xpose.msra.mxu0 %v880_v6 }
 0x31e   : > { %1765 = vmatprep.subr.bf16.mxu0 %v2215_v22 }
 0x31f   : > { %v1093_v10 = vpop.permute.xlu0 %1092 }
 0x320   : > { %v1098_v12 = vsel %vm763_vm2, %v1093_v10, 0 }
 0x323   : > { %v873_v7 = vpop.permute.xlu1 %872 }
 0x324   : > { %1756 = vmatmul.mubr.msk.bf16.vlgmr.msra.gmra.mrb[0].mxu0 %vm763_vm2, %v873_v7 }
 0x325   : > { %1767 = vmatprep.mubr.msk.bf16.mxu0 %vm2216_vm1, %v2215_v22 }
 0x327   : > { %v984_v8 = vpop.permute.xlu1 %983 }
 0x328   : > { %v989_v9 = vsel %vm763_vm2, %v984_v8, 0  ;;  %v1953_v8 = vld [vmem:[%s2735_s7] sm:$0xff]  }
 0x329   : > { %1766 = vmatpush3.bf16.xpose.msra.mxu0 %v989_v9 }
 0x32a   : > { %1777 = vmatprep.subr.bf16.mxu0 %v2215_v22 }
 0x32b   : > { %v982_v11 = vpop.permute.xlu1 %981 }
 0x32f   : > { %v1091_v13 = vpop.permute.xlu1 %1090 }
 0x330   : > { %1768 = vmatmul.mubr.msk.bf16.vlgmr.msra.gmra.mrb[4].mxu0 %vm763_vm2, %v982_v11 }
 0x331   : > { %1778 = vmatpush3.bf16.xpose.msra.mxu0 %v1098_v12  ;;  %1779 = vmatprep.mubr.msk.bf16.mxu0 %vm2216_vm1, %v2215_v22  ;;  %v1954_v12 = vld [vmem:[%s2735_s7 + $0x8] sm:$0xff]  }
 0x332   : > { %1789 = vmatprep.subr.bf16.mxu0 %v2215_v22 }
 0x338   : > { %1780 = vmatmul.mubr.msk.bf16.vlgmr.msra.gmra.mrb[8].mxu0 %vm763_vm2, %v1091_v13 }
 0x339   : > { %1793 = vmatprep.mubr.msk.bf16.mxu0 %vm2216_vm1, %v2215_v22  ;;  %1790 = vmatpush3.bf16.msra.mxu0 %v1953_v8  ;;  %v1963_v8 = vld [vmem:[%s2741_s13 + $0x30] sm:$0xff]  }
 0x33a   : > { %1791 = vmatprep.subr.bf16.mxu0 %v2215_v22 }
 0x33d   : > { %1792 = vmatpush3.bf16.msra.mxu0 %v1954_v12 }
 0x33e   : > { %1805 = vmatprep.subr.bf16.mxu0 %v2215_v22 }
 0x384   : > { %v804_v14 = vpop.f32.mrb[8].mxu1 }
 0x385   : > { %v1745_v15 = vpop.f32.mrb[9].mxu1  ;;  %v811_v16 = vsel %vm810_vm3, %v804_v14, -inf }
 0x386   : > { %812 = vmax.xlane.f32.xlu0 %v811_v16  ;;  %v807_v17 = vpop.f32.mrb[10].mxu1 }
 0x387   : > { %v1746_v18 = vpop.f32.mrb[11].mxu1 }
 0x3f7   : > { %v916_v19 = vpop.f32.mrb[0].mxu0 }
 0x3f8   : > { %v1757_v20 = vpop.f32.mrb[1].mxu0  ;;  %v922_v21 = vsel %vm810_vm3, %v916_v19, -inf }
 0x3f9   : > { %923 = vmax.xlane.f32.xlu1 %v922_v21  ;;  %v919_v23 = vpop.f32.mrb[2].mxu0 }
 0x3fa   : > { %v1758_v24 = vpop.f32.mrb[3].mxu0 }
 0x403   : > { %v1025_v25 = vpop.f32.mrb[4].mxu0 }
 0x404   : > { %v1769_v26 = vpop.f32.mrb[5].mxu0  ;;  %v1031_v27 = vsel %vm810_vm3, %v1025_v25, -inf }
 0x405   : > { %v1028_v28 = vpop.f32.mrb[6].mxu0  ;;  %1032 = vmax.xlane.f32.xlu0 %v1031_v27 }
 0x406   : > { %v1770_v29 = vpop.f32.mrb[7].mxu0 }
 0x40a   : > { %932 = vrot.lane.b32.xlu1 %v2545_v58, %s2220_s24 }
 0x40b   : > { %v1134_v30 = vpop.f32.mrb[8].mxu0 }
 0x40c   : > { %v1781_v31 = vpop.f32.mrb[9].mxu0  ;;  %v1140_v32 = vsel %vm810_vm3, %v1134_v30, -inf }
 0x40d   : > { %v1137_v33 = vpop.f32.mrb[10].mxu0  ;;  %1141 = vmax.xlane.f32.xlu0 %v1140_v32 }
 0x40e   : > { %1041 = vrot.lane.b32.xlu1 %v2545_v58, %s2221_s23  ;;  %v1782_v34 = vpop.f32.mrb[11].mxu0  ;;  %s2783_s23 = sld [smem:[#allocation16_spill]] }
 0x412   : > { %1150 = vrot.lane.b32.xlu1 %v2545_v58, %s2222_s16  ;;  %s2787_s16 = sld [smem:[#allocation28_spill]] }
 0x413   : > { %v813_v37 = vpop.xlane.xlu0 %812 }
 0x414   : > { %v814_v39 = vsub.f32 %v804_v14, %v813_v37  ;;  %s550_s25 = sand.u32 1, %s2783_s23  }
 0x415   : > { %s1641_s20 = sshll.u32 %s550_s25, 3 }
 0x416   : > { %v815_v40 = vmul.f32 1.442695, %v814_v39  ;;  %s552_s29 = scalar_lea.vmem [#allocation10], %s1641_s20 }
 0x417   : > { %s1513_s18 = sshll.u32 %s552_s29, 4  ;;  %s2676_s18 = int_to_ptr.vmem [resolvable:$true] %s1513_s18 }
 0x423   : > { %822 = vrot.lane.b32.xlu0 %v2545_v58, %s2223_s12  ;;  %s2103_s12 = scalar_lea.vmem %s2676_s18, 128 }
 0x424   : > { %p2104_p2 = scmp.ne.s32.totalorder %s2676_s18, %s2103_s12 }
 0x426   : > { %p2105_p12 = pnand %p2104_p2, %p2788_p10 }
 0x428   : > { %p2106_p1 = pneg %p2105_p12 }
 0x486   : > { %v924_v35 = vpop.xlane.xlu1 %923 }
 0x487   : > { %v925_v36 = vsub.f32 %v916_v19, %v924_v35 }
 0x489   : > { %v926_v38 = vmul.f32 1.442695, %v925_v36 }
 0x48a   : > { %v933_v53 = vpop.permute.xlu1 %932 }
 0x48b   : > { %1971 = vpow2.f32 %v926_v38 }
 0x48c   : > { %1973 = vpow2.f32 %v815_v40 }
 0x48e   : > { %v1042_v57 = vpop.permute.xlu1 %1041 }
 0x492   : > { %v1033_v41 = vpop.xlane.xlu0 %1032  ;;  %v1151_v61 = vpop.permute.xlu1 %1150 }
 0x493   : > { %v1034_v42 = vsub.f32 %v1025_v25, %v1033_v41  ;;  %v1663_v41 = vld [vmem:[#allocation7] ss:$0 sm:$0xff] }
 0x495   : > { %v1972_v43 = vpop.eup %1971  ;;  %v1035_v44 = vmul.f32 1.442695, %v1034_v42 }
 0x496   : > { %v928_v45 = vsel %vm810_vm3, %v1972_v43, 0.0  ;;  %v1974_v48 = vpop.eup %1973  ;;  %v931_v55 = vpack.c.bf16 %v1972_v43, %v1972_v43 }
 0x497   : > { %1975 = vpow2.f32 %v1035_v44  ;;  %929 = vadd.xlane.f32.xlu0 %v928_v45  ;;  %v820_v51 = vpack.c.bf16 %v1974_v48, %v1974_v48  ;;  %v817_v59 = vsel %vm810_vm3, %v1974_v48, 0.0 }
 0x49a   : > { %v1142_v46 = vpop.xlane.xlu0 %1141 }
 0x49b   : > { %v1143_v47 = vsub.f32 %v1134_v30, %v1142_v46 }
 0x49d   : > { %v1144_v49 = vmul.f32 1.442695, %v1143_v47 }
 0x49e   : > { %v823_v50 = vpop.permute.xlu0 %822 }
 0x49f   : > { %1977 = vpow2.f32 %v1144_v49  ;;  %1748 = vmatpush3.bf16.msra.mxu1 %v823_v50 }
 0x4a0   : > { %1759 = vmatprep.subr.bf16.mxu1 %v2215_v22 }
 0x4a1   : > { %v1976_v52 = vpop.eup %1975 }
 0x4a2   : > { %1750 = vmatmul.mubr.msk.bf16.vlgmr.msra.gmra.mrb[12].mxu1 %vm810_vm3, %v820_v51  ;;  %v1037_v54 = vsel %vm810_vm3, %v1976_v52, 0.0  ;;  %v1040_v60 = vpack.c.bf16 %v1976_v52, %v1976_v52 }
 0x4a3   : > { %1038 = vadd.xlane.f32.xlu1 %v1037_v54  ;;  %1760 = vmatpush3.bf16.msra.mxu1 %v933_v53  ;;  %v1955_v54 = vld [vmem:[%s2739_s11] sm:$0xff]  }
 0x4a4   : > { %1761 = vmatprep.mubr.msk.bf16.mxu1 %vm2216_vm1, %v2215_v22  ;;  %1771 = vmatprep.subr.bf16.mxu1 %v2215_v22 }
 0x4a9   : > { %v1978_v56 = vpop.eup %1977 }
 0x4aa   : > { %1762 = vmatmul.mubr.msk.bf16.vlgmr.msra.gmra.mrb[16].mxu1 %vm810_vm3, %v931_v55  ;;  %v1146_v58 = vsel %vm810_vm3, %v1978_v56, 0.0  ;;  %v1149_v62 = vpack.c.bf16 %v1978_v56, %v1978_v56  ;;  %v1957_v55 = vld [vmem:[%s2741_s13] sm:$0xff]   ;;  %v1958_v56 = vld [vmem:[%s2741_s13 + $0x8] sm:$0xff]  }
 0x4ab   : > { %1772 = vmatpush3.bf16.msra.mxu1 %v1042_v57  ;;  %1147 = vadd.xlane.f32.xlu0 %v1146_v58  ;;  %v1959_v57 = vld [vmem:[%s2741_s13 + $0x10] sm:$0xff]  }
 0x4ac   : > { %1773 = vmatprep.mubr.msk.bf16.mxu1 %vm2216_vm1, %v2215_v22  ;;  %1783 = vmatprep.subr.bf16.mxu1 %v2215_v22 }
 0x4af   : > { %818 = vadd.xlane.f32.xlu0 %v817_v59 }
 0x4b2   : > { %1774 = vmatmul.mubr.msk.bf16.vlgmr.msra.gmra.mrb[20].mxu1 %vm810_vm3, %v1040_v60 }
 0x4b3   : > { %1784 = vmatpush3.bf16.msra.mxu1 %v1151_v61  ;;  %1785 = vmatprep.mubr.msk.bf16.mxu1 %vm2216_vm1, %v2215_v22 }
 0x4b4   : > { %1797 = vmatprep.subr.bf16.mxu1 %v2215_v22 }
 0x4ba   : > { %1786 = vmatmul.mubr.msk.bf16.vlgmr.msra.gmra.mrb[24].mxu1 %vm810_vm3, %v1149_v62  ;;  %v1667_v62 = vld [vmem:[#allocation8] ss:$0 sm:$0xff] }
 0x4bb   : > { %1801 = vmatprep.mubr.msk.bf16.mxu1 %vm2216_vm1, %v2215_v22  ;;  %1798 = vmatpush3.bf16.msra.mxu1 %v1955_v54 }
 0x4bc   : > { %1799 = vmatprep.subr.bf16.mxu1 %v2215_v22 }
 0x524   : > { %v930_v63 = vpop.xlane.xlu0 %929 }
 0x525   : > { %1979 = vrcp.f32 %v930_v63 }
 0x52f   : > { %v1980_v6 = vpop.eup %1979 }
 0x530   : > { %v1039_v4 = vpop.xlane.xlu1 %1038 }
 0x531   : > { %1981 = vrcp.f32 %v1039_v4 }
 0x538   : > { %v1148_v13 = vpop.xlane.xlu0 %1147 }
 0x539   : > { %1983 = vrcp.f32 %v1148_v13 }
 0x53b   : > { %v1982_v16 = vpop.eup %1981 }
 0x53c   : > { %v819_v31 = vpop.xlane.xlu0 %818 }
 0x53d   : > { %1985 = vrcp.f32 %v819_v31 }
 0x543   : > { %v1984_v24 = vpop.eup %1983 }
 0x547   : > { %v1986_v32 = vpop.eup %1985 }
 0x575   : > { %v862_v0 = vpop.f32.mrb[12].mxu1 }
 0x576   : > { %v1751_v2 = vpop.f32.mrb[13].mxu1  ;;  %v869_v33 = vmul.f32 %v1986_v32, %v862_v0  ;;  %v1668_v0 = vld [vmem:[%s2738_s10] ss:$0 sm:$0xff] }
 0x577   : > { %v865_v3 = vpop.f32.mrb[14].mxu1 }
 0x578   : > { %v1752_v5 = vpop.f32.mrb[15].mxu1  ;;  %v870_v36 = vpack.c.bf16 %v869_v33, %v869_v33 }
 0x579   : > { %v1960_v5 = vld [vmem:[%s2741_s13 + $0x18] sm:$0xff]  }
 0x57d   : > { %v972_v7 = vpop.f32.mrb[16].mxu1 }
 0x57e   : > { %v979_v9 = vmul.f32 %v1980_v6, %v972_v7  ;;  %v1763_v10 = vpop.f32.mrb[17].mxu1  ;;  %v1961_v6 = vld [vmem:[%s2741_s13 + $0x20] sm:$0xff]   ;;  %v1962_v7 = vld [vmem:[%s2741_s13 + $0x28] sm:$0xff]  }
 0x57f   : > { %v975_v11 = vpop.f32.mrb[18].mxu1  ;;  %v1669_v10 = vld [vmem:[%s2784_s26] ss:$0 sm:$0xff]  ;;  %s2227_s26 = smov [#allocation10]  }
 0x580   : > { %v980_v14 = vpack.c.bf16 %v979_v9, %v979_v9  ;;  %v1764_v15 = vpop.f32.mrb[19].mxu1  ;;  %v1964_v9 = vld [vmem:[%s2741_s13 + $0x38] sm:$0xff]   ;;  %s2107_s20 = sshll.u32 %s2227_s26, 4  ;;  %s2108_s20 = int_to_ptr.vmem [resolvable:$false] %s2107_s20 }
 0x581   : > { %p2110_p4 = scmp.lt.s32.totalorder %s2676_s18, %s2108_s20 }
 0x582   : > { %1200 = vrot.lane.b32.xlu0 %v980_v14, %s2224_s17  ;;  %s1509_s17 = sadd.s32 %s2193_s21, %s1683_s19  ;;  %s1498_s21 = scalar_lea.sflag [#allocation4], %s550_s25 }
 0x583   : > { %s1684_s14 = sshll.u32 %s1509_s17, 7  ;;  %s2109_s19 = scalar_lea.vmem %s2108_s20, 256 }
 0x584   : > { %s2674_s22 = scalar_lea.hbm %s2787_s16, %s1684_s14  ;;  %p2111_p5 = scmp.lt.s32.totalorder %s2109_s19, %s2103_s12 }
 0x585   : > { %v1081_v17 = vpop.f32.mrb[20].mxu1 }
 0x586   : > { %v1088_v18 = vmul.f32 %v1982_v16, %v1081_v17  ;;  %v1775_v19 = vpop.f32.mrb[21].mxu1  ;;  %p2112_p6 = por %p2111_p5, %p2110_p4 }
 0x587   : > { %v1084_v20 = vpop.f32.mrb[22].mxu1 }
 0x588   : > { %v1089_v21 = vpack.c.bf16 %v1088_v18, %v1088_v18  ;;  %v1776_v23 = vpop.f32.mrb[23].mxu1  ;;  %p2113_p7 = pnand %p2112_p6, %p2106_p1 }
 0x58a   : > { %1203 = vrot.lane.b32.xlu1 %v1089_v21, %s2225_s27  ;;  %v1673_v21 = vld [vmem:[%s2785_s28] ss:$0 sm:$0xff] }
 0x58d   : > { %v1190_v25 = vpop.f32.mrb[24].mxu1 }
 0x58e   : > { %v1197_v26 = vmul.f32 %v1984_v24, %v1190_v25  ;;  %v1787_v27 = vpop.f32.mrb[25].mxu1 }
 0x58f   : > { %v1193_v28 = vpop.f32.mrb[26].mxu1 }
 0x590   : > { %v1198_v29 = vpack.c.bf16 %v1197_v26, %v1197_v26  ;;  %v1788_v30 = vpop.f32.mrb[27].mxu1 }
 0x592   : > { %1206 = vrot.lane.b32.xlu1 %v1198_v29, %s2226_s15 }
 0x5f4   : > { %v1201_v34 = vpop.permute.xlu0 %1200 }
 0x5f5   : > { %v1210_v37 = vsel %vm763_vm2, %v870_v36, %v1201_v34 }
 0x5fc   : > { %v1204_v35 = vpop.permute.xlu1 %1203 }
 0x5fd   : > { %v1212_v38 = vsel %vm810_vm3, %v1210_v37, %v1204_v35 }
 0x604   : > { %v1207_v39 = vpop.permute.xlu1 %1206 }
 0x605   : > { %v1215_v40 = vsel %vm1213_vm4, %v1212_v38, %v1207_v39 }
 0x606   : > { %1794 = vmatmul.mubr.msk.bf16.vlgmr.msra.gmra.mrb[12].mxu0 %vm564_vm0, %v1215_v40 }
 0x607   : > { %1821 = vmatprep.mubr.msk.bf16.mxu0 %vm2216_vm1, %v2215_v22  ;;  %1806 = vmatpush3.bf16.msra.mxu0 %v1957_v55 }
 0x608   : > { %1807 = vmatprep.subr.bf16.mxu0 %v2215_v22 }
 0x60b   : > { %1808 = vmatpush3.bf16.msra.mxu0 %v1958_v56 }
 0x60c   : > { %1809 = vmatprep.subr.bf16.mxu0 %v2215_v22 }
 0x60f   : > { %1810 = vmatpush3.bf16.msra.mxu0 %v1959_v57 }
 0x610   : > { %1811 = vmatprep.subr.bf16.mxu0 %v2215_v22 }
 0x613   : > { %1812 = vmatpush3.bf16.msra.mxu0 %v1960_v5 }
 0x614   : > { %1813 = vmatprep.subr.bf16.mxu0 %v2215_v22 }
 0x617   : > { %1814 = vmatpush3.bf16.msra.mxu0 %v1961_v6 }
 0x618   : > { %1815 = vmatprep.subr.bf16.mxu0 %v2215_v22 }
 0x61b   : > { %1816 = vmatpush3.bf16.msra.mxu0 %v1962_v7 }
 0x61c   : > { %1817 = vmatprep.subr.bf16.mxu0 %v2215_v22 }
 0x61f   : > { %1818 = vmatpush3.bf16.msra.mxu0 %v1963_v8 }
 0x620   : > { %1819 = vmatprep.subr.bf16.mxu0 %v2215_v22 }
 0x623   : > { %1820 = vmatpush3.bf16.msra.mxu0 %v1964_v9 }
 0x6d9   : > { %v1275_v42 = vpop.f32.mrb[12].mxu0 }
 0x6da   : > { %v1276_v43 = vadd.f32 %v1663_v41, %v1275_v42  ;;  %v1795_v44 = vpop.f32.mrb[13].mxu0 }
 0x6db   : > { %v1278_v45 = vpop.f32.mrb[14].mxu0 }
 0x6dc   : > { %v2613_v46 = vadd.f32 %v1276_v43, %v2501_v1  ;;  %v1796_v47 = vpop.f32.mrb[15].mxu0  ;;  %v1956_v1 = vld [vmem:[%s2739_s11 + $0x8] sm:$0xff]  }
 0x6dd   : > { %1800 = vmatpush3.bf16.msra.mxu1 %v1956_v1 }
 0x6de   : > { %v1284_v48 = vsel %vm564_vm0, %v2613_v46, 0.0 }
 0x6df   : > { %1285 = vadd.xlane.f32.xlu1 %v1284_v48 }
 0x76c   : > { %v1286_v49 = vpop.xlane.xlu1 %1285 }
 0x76d   : > { %v1287_v50 = vmul.f32 0.03125, %v1286_v49 }
 0x76f   : > { %v1288_v51 = vsub.f32 %v2613_v46, %v1287_v50 }
 0x771   : > { %v1289_v52 = vmul.f32 %v1288_v51, %v1288_v51 }
 0x773   : > { %v1290_v53 = vsel %vm564_vm0, %v1289_v52, 0.0 }
 0x774   : > { %1291 = vadd.xlane.f32.xlu0 %v1290_v53 }
 0x801   : > { %v1292_v58 = vpop.xlane.xlu0 %1291 }
 0x802   : > { %v1293_v59 = vmul.f32 0.03125, %v1292_v58 }
 0x804   : > { %v1294_v60 = vadd.f32 1e-05, %v1293_v59 }
 0x806   : > { %1987 = vrsqrt.f32 %v1294_v60 }
 0x810   : > { %v1988_v61 = vpop.eup %1987 }
 0x811   : > { %v1296_v63 = vmul.f32 %v1988_v61, %v1288_v51 }
 0x813   : > { %v1303_v2 = vmul.f32 %v1667_v62, %v1296_v63 }
 0x815   : > { %v1310_v3 = vadd.f32 %v1668_v0, %v1303_v2 }
 0x817   : > { %v1311_v4 = vpack.c.bf16 %v1310_v3, %v1310_v3 }
 0x819   : > { %1802 = vmatmul.mubr.msk.bf16.vlgmr.msra.gmra.mrb[28].mxu1 %vm564_vm0, %v1311_v4 }
 0x8ec   : > { %v1372_v11 = vpop.f32.mrb[28].mxu1 }
 0x8ed   : > { %v1373_v12 = vadd.f32 %v1669_v10, %v1372_v11  ;;  %v1803_v13 = vpop.f32.mrb[29].mxu1 }
 0x8ee   : > { %v1375_v14 = vpop.f32.mrb[30].mxu1 }
 0x8ef   : > { %v1379_v15 = vmul.f32 0.70710677, %v1373_v12  ;;  %v1804_v16 = vpop.f32.mrb[31].mxu1  ;;  %v1378_v17 = vmul.f32 0.5, %v1373_v12 }
 0x8f1   : > { %1989 = verf.f32 %v1379_v15 }
 0x8fb   : > { %v1990_v22 = vpop.eup %1989 }
 0x8fc   : > { %v1381_v18 = vadd.f32 1.0, %v1990_v22 }
 0x8fe   : > { %v1382_v19 = vmul.f32 %v1381_v18, %v1378_v17 }
 0x900   : > { %v1383_v20 = vpack.c.bf16 %v1382_v19, %v1382_v19 }
 0x902   : > { %1822 = vmatmul.mubr.bf16.vlgmr.msra.gmra.mrb[16].mxu0 %v1383_v20 }
 0x9d5   : > { %v1489_v23 = vpop.f32.mrb[16].mxu0 }
 0x9d6   : > { %v1490_v24 = vadd.f32 %v1673_v21, %v1489_v23  ;;  %v1823_v25 = vpop.f32.mrb[17].mxu0 }
 0x9d7   : > { %v1492_v26 = vpop.f32.mrb[18].mxu0 }
 0x9d8   : > { %v1495_v27 = vadd.f32 %v1490_v24, %v2613_v46  ;;  %v1824_v28 = vpop.f32.mrb[19].mxu0 }
 0x9da   : > { %1496 = vst.msk [vmem:[%s552_s29] sm:$0xff] %vm564_vm0, %v1495_v27 }
 0x9db   : > { %2116 = shalt.err (!%p2113_p7)
}
 0x9dc   : > { %s2117_s25 = scalar_lea.hbm %s2674_s22, 128  ;;  %s2121_s15 = scalar_lea.hbm %s2787_s16, 512 }
 0x9dd   : > { %p2118_p9 = scmp.ne.s32.totalorder %s2674_s22, %s2117_s25  ;;  %p2122_p3 = scmp.lt.u32.totalorder %s2674_s22, %s2787_s16 }
 0x9de   : > { %p2123_p8 = scmp.lt.u32.totalorder %s2121_s15, %s2117_s25  ;;  %p2125_p2 = scmp.lt.u32.totalorder %s2117_s25, %s2674_s22 }
 0x9df   : > { %p2119_p11 = pnand %p2118_p9, %p2788_p10 }
 0x9e0   : > { %p2124_p0 = por %p2123_p8, %p2122_p3 }
 0x9e1   : > { %p2120_p13 = pneg %p2119_p11 }
 0x9e2   : > { %p2126_p12 = por %p2125_p2, %p2124_p0 }
 0x9e4   : > { %p2127_p1 = pnand %p2126_p12, %p2120_p13 }
 0x9e6   : > { %2130 = shalt.err (!%p2127_p1)
}
 0x9e7   : > { %1841 = dma.vmem_to_hbm [thread:$0]  (%p2788_p10), %s2676_s18, 128, %s2674_s22, %s1498_s21  }
 0x9e8 PF: > { %s2789_s29 = sld [smem:[#allocation20_spill]]  ;;  %s2790_s24 = sld [smem:[#allocation15_spill]] }
 0x9e9   : > { %s2791_s23 = sld [smem:[#allocation24_spill]] }
 0x9ee   : > { %p1868_p4 = scmp.ge.s32.totalorder %s2789_s29, 2  ;;  %s1525_s12 = sand.u32 1, %s2790_s24  }
 0x9ef   : > { %p2792_p5 = scmp.ne.s32.totalorder %s2791_s23, 0  ;;  %s1526_s26 = scalar_lea.sflag [#allocation4], %s1525_s12 }
 0x9f1   : > { %p1857_p6 = pnand %p1868_p4, %p2792_p5 }
 0x9f3   : > { %2176 = dma.done.wait (!%p1857_p6), %s1526_s26, 128  }
 0x9f4   : > { %2178 = vsyncadd (!%p1857_p6), %s1526_s26, 4294967168  ;;  %s31_s25 = sadd.s32 1, %s2789_s29   ;;  %s2793_s18 = sld [smem:[#allocation16_spill]] }
 0x9f5   : > { %p28_p7 = scmp.ge.s32.totalorder %s31_s25, 6   ;;  %s2794_s19 = sld [smem:[#allocation17_spill]] }
 0x9f6   : > { %s2795_s20 = sld [smem:[#allocation25_spill]]  ;;  %s2796_s21 = sld [smem:[#allocation18_spill]] }
 0x9f7   : > { %s2797_s22 = sld [smem:[#allocation19_spill]]  ;;  %s2798_s23 = sld [smem:[#allocation21_spill]] }
 0x9f8   : > { %s2799_s24 = sld [smem:[#allocation23_spill]]  ;;  %30 = sbr.rel (!%p28_p7) target bundleno = 12 (0xc), region = 133 }
 0x9ff   :  { %1531 = vsyncpa [#allocation3], 1 }
 0xa00   :  { %1533 = vsyncpa [#allocation3 + $0x1], 1 }
 0xa01   :  { %1534 = vsyncpa [#allocation6], 1 }
 0xa02   :  { %1535 = vsyncpa [#allocation9], 1 }
 0xa03   :  { %1536 = vsyncpa [#allocation4], 1 }
 0xa04   :  { %1538 = vsyncpa [#allocation4 + $0x1], 1 }

</bundles_post_ra>
